<compile_context>
chip_gen: v7x
topology: tpu7x:2x2x1
jax: 0.10.0
libtpu: 0.0.40
codegen_flags: <defaults>
</compile_context>

<pallas_src>
import functools

import jax
import jax.numpy as jnp
import numpy as np
from jax.experimental import pallas as pl
from jax.experimental.pallas import tpu as pltpu

TWO_PI = 2.0 * np.pi

# ---- module constants from the PyTorch spec ----
L = 0.2
LMBDA = 5e-7
Z = 100
N_LAYERS = 5
N_DETECTORS = 10


# ----------------------------------------------------------------------------
# Pallas kernel: modulation_layer  (elementwise complex multiply by exp(j*2*pi*phase))
# ----------------------------------------------------------------------------
def _modulation_kernel(phase_ref, xr_ref, xi_ref, or_ref, oi_ref, cos_sc, sin_sc):
    # Grid = (row_blocks, batch); batch is the innermost ("arbitrary") axis, so for a
    # given row block the phase tile stays resident (its DMA is skipped for b > 0) and
    # the trig tables are computed once per row block and reused across the batch.
    b = pl.program_id(1)

    @pl.when(b == 0)
    def _():
        ang = TWO_PI * phase_ref[...]        # (tile_m, N)
        cos_sc[...] = jnp.cos(ang)           # Re(exp(j*ang))
        sin_sc[...] = jnp.sin(ang)           # Im(exp(j*ang))

    c = cos_sc[...]
    s = sin_sc[...]
    xr = xr_ref[0]                           # (tile_m, N)  leading batch-block dim is 1
    xi = xi_ref[0]
    # (xr + j*xi) * (c + j*s)
    or_ref[0] = xr * c - xi * s
    oi_ref[0] = xr * s + xi * c


def _round_up(x, m):
    return ((x + m - 1) // m) * m


def _pick_tile_m(M, N, target_block_bytes=2 * 1024 * 1024):
    """Row-block size: multiple of 8 (or full M), ~2 MiB f32 per plane, >= 2 row blocks
    when M allows so the "parallel" row axis keeps both v7x TensorCores busy."""
    if M <= 8:
        return M                                        # block dim == full dim is legal
    budget = max(8, (target_block_bytes // (4 * N)) // 8 * 8)
    tile_m = min(budget, _round_up(M, 8))
    if pl.cdiv(M, tile_m) < 2:                          # split rows for megacore
        tile_m = max(8, _round_up(pl.cdiv(M, 2), 8))
    return tile_m


def modulation_layer_forward(x_real, x_imag, phase_values):
    """Applies exp(j*2*pi*phase) elementwise to a batched complex field.

    x_real, x_imag : (B, M, N) float32 planes of the field.
    phase_values   : (M, N)    float32 phases (broadcast over batch).
    Returns (out_real, out_imag), each (B, M, N) float32.
    """
    B, M, N = x_real.shape
    assert x_imag.shape == (B, M, N)
    assert phase_values.shape == (M, N)

    tile_m = _pick_tile_m(M, N)
    grid = (pl.cdiv(M, tile_m), B)           # batch innermost -> phase DMA + trig reuse

    ph_spec = pl.BlockSpec((tile_m, N), lambda i, b: (i, 0))
    x_spec = pl.BlockSpec((1, tile_m, N), lambda i, b: (b, i, 0))

    out_shape = (
        jax.ShapeDtypeStruct((B, M, N), jnp.float32),
        jax.ShapeDtypeStruct((B, M, N), jnp.float32),
    )

    out_r, out_i = pl.pallas_call(
        _modulation_kernel,
        out_shape=out_shape,
        grid_spec=pltpu.PrefetchScalarGridSpec(
            num_scalar_prefetch=0,
            grid=grid,
            in_specs=[ph_spec, x_spec, x_spec],
            out_specs=(x_spec, x_spec),
            scratch_shapes=[
                pltpu.VMEM((tile_m, N), jnp.float32),   # cached cos(2*pi*phase)
                pltpu.VMEM((tile_m, N), jnp.float32),   # cached sin(2*pi*phase)
            ],
        ),
        compiler_params=pltpu.CompilerParams(
            dimension_semantics=("parallel", "arbitrary"),
            vmem_limit_bytes=40 * 1024 * 1024,   # ~5 planes x 2 bufs x <=2 MiB + 2 scratch
        ),
    )(phase_values.astype(jnp.float32),
      x_real.astype(jnp.float32),
      x_imag.astype(jnp.float32))

    return out_r, out_i


# ----------------------------------------------------------------------------
# propagation_layer (angular-spectrum method).  FFTs use XLA's jnp.fft.
# ----------------------------------------------------------------------------
def make_transfer_function(M, L_, lmbda, z):
    # Static per-network transfer function H, precomputed at float64 in numpy.
    dx = L_ / M
    k = 2.0 * np.pi / lmbda
    fx = np.linspace(-1.0 / (2.0 * dx), 1.0 / (2.0 * dx) - 1.0 / L_, M)
    FX, FY = np.meshgrid(fx, fx, indexing="ij")
    H = np.exp(-1j * np.pi * lmbda * z * (FX ** 2 + FY ** 2)) * np.exp(1j * k * z)
    H = np.fft.fftshift(H, axes=(-2, -1))
    return jnp.asarray(H, dtype=jnp.complex64)


def propagation_forward_folded(w, H):
    # Runs in the "shifted domain": the reference layer's leading fftshift and trailing
    # ifftshift have been folded into the neighbouring modulation phase tables.
    return jnp.fft.ifft2(H * jnp.fft.fft2(w))


def propagation_forward_reference(u, H):
    # Unfolded reference, exactly as in the PyTorch spec.
    U1 = jnp.fft.fft2(jnp.fft.fftshift(u, axes=(-2, -1)))
    return jnp.fft.ifftshift(jnp.fft.ifft2(H * U1), axes=(-2, -1))


# ----------------------------------------------------------------------------
# imaging_layer: |u|^2, 10 detector-window sums, per-sample L2 normalization.
# (start_row/start_col are all zeros per the spec, so the 10 values are identical.)
# ----------------------------------------------------------------------------
def imaging_forward(u, square_size, start_row, start_col):
    intensity = jnp.abs(u) ** 2                       # (B, M, N) float32
    vals = []
    for i in range(N_DETECTORS):
        r = int(start_row[i])
        c = int(start_col[i])
        vals.append(jnp.sum(intensity[:, r:r + square_size, c:c + square_size],
                            axis=(1, 2)))
    values = jnp.stack(vals, axis=1)                  # (B, 10)
    nrm = jnp.sqrt(jnp.sum(values * values, axis=1, keepdims=True))
    return values / nrm


# ----------------------------------------------------------------------------
# Full OpticalNetwork forward.
# ----------------------------------------------------------------------------
class OpticalNetworkPallas:
    def __init__(self, M, L_, lmbda, z, key):
        self.M = M
        self.H = make_transfer_function(M, L_, lmbda, z)
        # 5 modulation layers, phases ~ U[0, 1) (matches nn.init.uniform_(a=0, b=1)).
        keys = jax.random.split(key, N_LAYERS)
        self.phases = [jax.random.uniform(k, (M, M), dtype=jnp.float32) for k in keys]
        # fftshift folding: pre-shift the phase tables ONCE so inter-layer
        # ifftshift/fftshift pairs can be dropped (exact: fftshift(ifftshift(w)) == w).
        self.shifted_phases = [jnp.fft.fftshift(p, axes=(-2, -1)) for p in self.phases]
        self.square_size = round(M / 20)
        # Per the spec, start_row / start_col are all zeros.
        self.start_row = np.zeros(N_DETECTORS, dtype=int)
        self.start_col = np.zeros(N_DETECTORS, dtype=int)

    def final_field(self, u, use_pallas=True):
        if use_pallas:
            # Folded ("shifted domain") path + Pallas modulation kernel.
            w = jnp.fft.fftshift(u, axes=(-2, -1))
            for p_shifted in self.shifted_phases:
                w = propagation_forward_folded(w, self.H)
                wr, wi = modulation_layer_forward(jnp.real(w), jnp.imag(w), p_shifted)
                w = jax.lax.complex(wr, wi)
            return jnp.fft.ifftshift(w, axes=(-2, -1))
        # Pure-XLA reference path, identical structure to the PyTorch spec.
        for p in self.phases:
            u = propagation_forward_reference(u, self.H)
            u = u * jnp.exp(1j * (TWO_PI * p)).astype(jnp.complex64)
        return u

    def __call__(self, u, use_pallas=True):
        u = self.final_field(u, use_pallas=use_pallas)
        return imaging_forward(u, self.square_size, self.start_row, self.start_col)


# ----------------------------------------------------------------------------
if __name__ == "__main__":
    # Spec uses M=250; use a smaller grid for the demo.
    M_DEMO = 128
    BATCH = 2

    key = jax.random.PRNGKey(0)
    k_net, k_xr, k_xi, k_odd = jax.random.split(key, 4)

    net = OpticalNetworkPallas(M_DEMO, L, LMBDA, Z, k_net)

    x_real = jax.random.normal(k_xr, (BATCH, M_DEMO, M_DEMO), dtype=jnp.float32)
    x_imag = jax.random.normal(k_xi, (BATCH, M_DEMO, M_DEMO), dtype=jnp.float32)
    u0 = jax.lax.complex(x_real, x_imag)

    # --- unit check 1: modulation kernel vs plain-JAX complex math (aligned shape) ---
    ph0 = net.phases[0]
    out_r, out_i = modulation_layer_forward(x_real, x_imag, ph0)
    jax.block_until_ready((out_r, out_i))
    ref = (x_real + 1j * x_imag) * jnp.exp(1j * (TWO_PI * ph0))
    np.testing.assert_allclose(np.asarray(out_r), np.asarray(jnp.real(ref)),
                               rtol=1e-4, atol=1e-4)
    np.testing.assert_allclose(np.asarray(out_i), np.asarray(jnp.imag(ref)),
                               rtol=1e-4, atol=1e-4)

    # --- unit check 2: ragged shape (rows % tile_m != 0, lanes not multiple of 128,
    #     batch > 2) exercises Pallas store masking, phase-DMA reuse and trig caching ---
    ko1, ko2, ko3 = jax.random.split(k_odd, 3)
    ph_odd = jax.random.uniform(ko1, (50, 70), dtype=jnp.float32)
    xr_odd = jax.random.normal(ko2, (3, 50, 70), dtype=jnp.float32)
    xi_odd = jax.random.normal(ko3, (3, 50, 70), dtype=jnp.float32)
    or_odd, oi_odd = modulation_layer_forward(xr_odd, xi_odd, ph_odd)
    jax.block_until_ready((or_odd, oi_odd))
    ref_odd = (xr_odd + 1j * xi_odd) * jnp.exp(1j * (TWO_PI * ph_odd))
    np.testing.assert_allclose(np.asarray(or_odd), np.asarray(jnp.real(ref_odd)),
                               rtol=1e-4, atol=1e-4)
    np.testing.assert_allclose(np.asarray(oi_odd), np.asarray(jnp.imag(ref_odd)),
                               rtol=1e-4, atol=1e-4)

    # --- full network: folded Pallas path vs unfolded pure-XLA reference path ---
    field_pallas = jax.jit(functools.partial(net.final_field, use_pallas=True))(u0)
    field_ref = jax.jit(functools.partial(net.final_field, use_pallas=False))(u0)
    jax.block_until_ready((field_pallas, field_ref))
    # Compare the final complex fields (stronger than the near-constant detector output).
    np.testing.assert_allclose(np.asarray(field_pallas), np.asarray(field_ref),
                               rtol=5e-3, atol=5e-3)

    fwd_pallas = jax.jit(functools.partial(net.__call__, use_pallas=True))
    fwd_ref = jax.jit(functools.partial(net.__call__, use_pallas=False))
    out = fwd_pallas(u0)
    out_ref = fwd_ref(u0)
    jax.block_until_ready((out, out_ref))
    assert out.shape == (BATCH, N_DETECTORS)
    np.testing.assert_allclose(np.asarray(out), np.asarray(out_ref),
                               rtol=1e-3, atol=2e-3)

    print("KERNEL_OK")
</pallas_src>

<mosaic_0001>
module attributes {stable_mosaic.version = 11 : i64} {
  func.func @_modulation_kernel(%arg0: i32, %arg1: i32, %arg2: memref<64x128xf32, #tpu.memory_space<vmem>>, %arg3: memref<1x64x128xf32, #tpu.memory_space<vmem>>, %arg4: memref<1x64x128xf32, #tpu.memory_space<vmem>>, %arg5: memref<1x64x128xf32, #tpu.memory_space<vmem>>, %arg6: memref<1x64x128xf32, #tpu.memory_space<vmem>>, %arg7: memref<64x128xf32, #tpu.memory_space<vmem>>, %arg8: memref<64x128xf32, #tpu.memory_space<vmem>>) attributes {dimension_semantics = [#tpu.dimension_semantics<parallel>, #tpu.dimension_semantics<arbitrary>], iteration_bounds = array<i64: 2, 2>, scalar_prefetch = 0 : i64, scratch_operands = 2 : i64, tpu.core_type = #tpu.core_type<tc>, window_params = [{transform_indices = @transform_0, window_bounds = array<i64: 64, 128>}, {transform_indices = @transform_1, window_bounds = array<i64: 1, 64, 128>}, {transform_indices = @transform_2, window_bounds = array<i64: 1, 64, 128>}, {transform_indices = @transform_3, window_bounds = array<i64: 1, 64, 128>}, {transform_indices = @transform_4, window_bounds = array<i64: 1, 64, 128>}]} {
    %c0_i32 = arith.constant 0 : i32
    %0 = arith.cmpi eq, %arg1, %c0_i32 : i32
    %1 = arith.extui %0 : i1 to i32
    %c0_i32_0 = arith.constant 0 : i32
    %2 = arith.cmpi ne, %1, %c0_i32_0 : i32
    scf.if %2 {
      %c0_16 = arith.constant 0 : index
      %c0_17 = arith.constant 0 : index
      %21 = vector.load %arg2[%c0_16, %c0_17] : memref<64x128xf32, #tpu.memory_space<vmem>>, vector<64x128xf32>
      %cst = arith.constant 6.28318548 : f32
      %22 = vector.broadcast %cst : f32 to vector<64x128xf32>
      %23 = arith.mulf %22, %21 : vector<64x128xf32>
      %24 = math.cos %23 : vector<64x128xf32>
      %c0_18 = arith.constant 0 : index
      %c0_19 = arith.constant 0 : index
      %25 = vector.load %arg7[%c0_18, %c0_19] : memref<64x128xf32, #tpu.memory_space<vmem>>, vector<64x128xf32>
      tpu.vector_store %arg7[%c0_18, %c0_19], %24 {strides = array<i32>} : memref<64x128xf32, #tpu.memory_space<vmem>>, vector<64x128xf32>,
      %26 = math.sin %23 : vector<64x128xf32>
      %c0_20 = arith.constant 0 : index
      %c0_21 = arith.constant 0 : index
      %27 = vector.load %arg8[%c0_20, %c0_21] : memref<64x128xf32, #tpu.memory_space<vmem>>, vector<64x128xf32>
      tpu.vector_store %arg8[%c0_20, %c0_21], %26 {strides = array<i32>} : memref<64x128xf32, #tpu.memory_space<vmem>>, vector<64x128xf32>,
    } else {
    }
    %c0 = arith.constant 0 : index
    %c0_1 = arith.constant 0 : index
    %3 = vector.load %arg7[%c0, %c0_1] : memref<64x128xf32, #tpu.memory_space<vmem>>, vector<64x128xf32>
    %c0_2 = arith.constant 0 : index
    %c0_3 = arith.constant 0 : index
    %4 = vector.load %arg8[%c0_2, %c0_3] : memref<64x128xf32, #tpu.memory_space<vmem>>, vector<64x128xf32>
    %c0_4 = arith.constant 0 : index
    %c0_5 = arith.constant 0 : index
    %c0_6 = arith.constant 0 : index
    %5 = vector.load %arg3[%c0_4, %c0_5, %c0_6] : memref<1x64x128xf32, #tpu.memory_space<vmem>>, vector<1x64x128xf32>
    %6 = vector.shape_cast %5 : vector<1x64x128xf32> to vector<64x128xf32>
    %c0_7 = arith.constant 0 : index
    %c0_8 = arith.constant 0 : index
    %c0_9 = arith.constant 0 : index
    %7 = vector.load %arg4[%c0_7, %c0_8, %c0_9] : memref<1x64x128xf32, #tpu.memory_space<vmem>>, vector<1x64x128xf32>
    %8 = vector.shape_cast %7 : vector<1x64x128xf32> to vector<64x128xf32>
    %9 = arith.mulf %6, %3 : vector<64x128xf32>
    %10 = arith.mulf %8, %4 : vector<64x128xf32>
    %11 = arith.subf %9, %10 : vector<64x128xf32>
    %c0_10 = arith.constant 0 : index
    %c0_11 = arith.constant 0 : index
    %c0_12 = arith.constant 0 : index
    %12 = vector.load %arg5[%c0_10, %c0_11, %c0_12] : memref<1x64x128xf32, #tpu.memory_space<vmem>>, vector<1x64x128xf32>
    %13 = vector.shape_cast %12 : vector<1x64x128xf32> to vector<64x128xf32>
    %14 = vector.shape_cast %11 : vector<64x128xf32> to vector<1x64x128xf32>
    tpu.vector_store %arg5[%c0_10, %c0_11, %c0_12], %14 {strides = array<i32>} : memref<1x64x128xf32, #tpu.memory_space<vmem>>, vector<1x64x128xf32>,
    %15 = arith.mulf %6, %4 : vector<64x128xf32>
    %16 = arith.mulf %8, %3 : vector<64x128xf32>
    %17 = arith.addf %15, %16 : vector<64x128xf32>
    %c0_13 = arith.constant 0 : index
    %c0_14 = arith.constant 0 : index
    %c0_15 = arith.constant 0 : index
    %18 = vector.load %arg6[%c0_13, %c0_14, %c0_15] : memref<1x64x128xf32, #tpu.memory_space<vmem>>, vector<1x64x128xf32>
    %19 = vector.shape_cast %18 : vector<1x64x128xf32> to vector<64x128xf32>
    %20 = vector.shape_cast %17 : vector<64x128xf32> to vector<1x64x128xf32>
    tpu.vector_store %arg6[%c0_13, %c0_14, %c0_15], %20 {strides = array<i32>} : memref<1x64x128xf32, #tpu.memory_space<vmem>>, vector<1x64x128xf32>,
    return
  }
  func.func @transform_0(%arg0: i32, %arg1: i32) -> (i32, i32) {
    %c0_i32 = arith.constant 0 : i32
    %c0_i32_0 = arith.constant 0 : i32
    return %arg0, %c0_i32 : i32, i32
  }
  func.func @transform_1(%arg0: i32, %arg1: i32) -> (i32, i32, i32) {
    %c0_i32 = arith.constant 0 : i32
    %c0_i32_0 = arith.constant 0 : i32
    return %arg1, %arg0, %c0_i32 : i32, i32, i32
  }
  func.func @transform_2(%arg0: i32, %arg1: i32) -> (i32, i32, i32) {
    %c0_i32 = arith.constant 0 : i32
    %c0_i32_0 = arith.constant 0 : i32
    return %arg1, %arg0, %c0_i32 : i32, i32, i32
  }
  func.func @transform_3(%arg0: i32, %arg1: i32) -> (i32, i32, i32) {
    %c0_i32 = arith.constant 0 : i32
    %c0_i32_0 = arith.constant 0 : i32
    return %arg1, %arg0, %c0_i32 : i32, i32, i32
  }
  func.func @transform_4(%arg0: i32, %arg1: i32) -> (i32, i32, i32) {
    %c0_i32 = arith.constant 0 : i32
    %c0_i32_0 = arith.constant 0 : i32
    return %arg1, %arg0, %c0_i32 : i32, i32, i32
  }
}

</mosaic_0001>

<bundles_post_ra>
// kernel: tpu_custom_call.1
= control target key start
LH: loop header
LB: loop body
LE: loop exit
PB: predicated region body
PF: predicated region fallthrough
CT: control target
= control target key end

     0   :  { %s4148_s0 = inlined_call_operand.hbm [shape: f32[128,128], index: 0, kind: input, shape index: {}]   ;;  %s4149_s1 = inlined_call_operand.hbm [shape: f32[2,128,128], index: 1, kind: input, shape index: {}]   ;;  %s4150_s2 = inlined_call_operand.hbm [shape: f32[2,128,128], index: 2, kind: input, shape index: {}]   ;;  %s4151_s3 = inlined_call_operand.hbm [shape: f32[2,128,128], index: 3, kind: output, shape index: {0}]   ;;  %s4152_s4 = inlined_call_operand.hbm [shape: f32[2,128,128], index: 4, kind: output, shape index: {1}]  }
   0x1   :  { %4177 = sst [smem:[#allocation24_spill]] %s4149_s1 }
   0x2   :  { %4178 = sst [smem:[#allocation25_spill]] %s4151_s3 }
   0x3   :  { %4179 = sst [smem:[#allocation26_spill]] %s4152_s4 }
   0x4   :  { %10 = vsyncpa [#allocation5], 0 }
   0x5   :  { %12 = vsyncpa [#allocation5 + $0x1], 0 }
   0x6   :  { %13 = vsyncpa [#allocation8], 0 }
   0x7   :  { %15 = vsyncpa [#allocation8 + $0x1], 0 }
   0x8   :  { %16 = vsyncpa [#allocation6], 0 }
   0x9   :  { %18 = vsyncpa [#allocation6 + $0x1], 0 }
   0xa   :  { %19 = vsyncpa [#allocation12], 0 }
   0xb   :  { %21 = vsyncpa [#allocation12 + $0x1], 0  ;;  %s2909_s15 = smov 0   ;;  %s2911_s16 = smov 0  }
   0xc   :  { %s2913_s17 = smov 0   ;;  %s2915_s18 = smov 0  }
   0xd   :  { %s2917_s19 = smov 0   ;;  %s2919_s20 = smov 0  }
   0xe   :  { %s2921_s21 = smov 0   ;;  %s2923_s22 = smov 0  }
   0xf   :  { %s2925_s23 = smov 0   ;;  %s2927_s24 = smov 0  }
  0x10   :  { %s2929_s25 = smov 0  }
  0x11 LB: > { %4180 = sst [smem:[#allocation17_spill]] %s2827_s15  ;;  %s2965_s26 = sadd.s32 4294967295, %s2867_s25   ;;  %s2867_s25 = sphi %s2929_s25, %s27_s25   ;;  %s2863_s24 = sphi %s2927_s24, %s4242_s24   ;;  %s2859_s23 = sphi %s2925_s23, %s4234_s23   ;;  %s2855_s22 = sphi %s2923_s22, %s4241_s22   ;;  %s2851_s21 = sphi %s2921_s21, %s4233_s21   ;;  %s2847_s20 = sphi %s2919_s20, %s4240_s20   ;;  %s2843_s19 = sphi %s2917_s19, %s4239_s19   ;;  %s2839_s18 = sphi %s2915_s18, %s4238_s18   ;;  %s2835_s17 = sphi %s2913_s17, %s4232_s17   ;;  %s2831_s16 = sphi %s2911_s16, %s4237_s16   ;;  %s2827_s15 = sphi %s2909_s15, %s4236_s15  }
  0x12   : > { %4181 = sst [smem:[#allocation18_spill]] %s2835_s17  ;;  %s2332_s27 = sadd.s32 4294967294, %s2867_s25  }
  0x13   : > { %4182 = sst [smem:[#allocation19_spill]] %s2859_s23  ;;  %s36_s28 = sadd.s32 1, %s2859_s23 }
  0x14   : > { %p37_p0 = scmp.ge.s32.totalorder %s36_s28, 2  ;;  %s39_s29 = sadd.s32 1, %s2863_s24 }
  0x15   : > { %p4161_p1 = scmp.eq.s32.totalorder %s2867_s25, 0  ;;  %p4160_p2 = scmp.eq.s32.totalorder %s2965_s26, 0 }
  0x16   : > { %s4244_s28 = smov (%p37_p0, %s36_s28), 0  ;;  %s4246_s29 = smov (!%p37_p0, %s39_s29), %s2863_s24 }
  0x17   : > { %4183 = sst [smem:[#allocation20_spill]] %s4244_s28  ;;  %s69_s30 = ssub.s32 %s2859_s23, %s4244_s28 }
  0x18   : > { %s74_s5 = sadd.s32 1, %s2835_s17  ;;  %p41_p3 = scmp.ge.s32.totalorder %s4246_s29, 2 }
  0x19   : > { %p87_p4 = scmp.ne.s32.totalorder %s2831_s16, %s2827_s15  ;;  %p81_p5 = scmp.ne.s32.totalorder %s2835_s17, %s2831_s16 }
  0x1a   : > { %p141_p6 = scmp.eq.s32.totalorder %s2965_s26, 3  ;;  %s4248_s29 = smov (%p41_p3, %s4246_s29), 0 }
  0x1b   : > { %4184 = sst [smem:[#allocation21_spill]] %s4248_s29  ;;  %p2987_p7 = por %p87_p4, %p4160_p2 }
  0x1c   : > { %p2991_p8 = por %p141_p6, %p81_p5  ;;  %s2997_s8 = ssub.s32 %s2863_s24, %s4248_s29 }
  0x1d   : > { %s4185_s6 = scalar_select %p2987_p7, 1, 0 }
  0x1e   : > { %s4186_s7 = scalar_select %p2991_p8, 1, 0 }
  0x1f   : > { %p147_p9 = scmp.eq.s32.totalorder %s2332_s27, 3  ;;  %s71_s9 = sor.u32 %s69_s30, %s2997_s8 }
  0x20   : > { %p3002_p10 = por %p81_p5, %p4161_p1  ;;  %p72_p11 = scmp.eq.s32.totalorder %s71_s9, 0 }
  0x21   : > { %p3006_p12 = por %p147_p9, %p87_p4  ;;  %p4159_p13 = scmp.lt.s32.totalorder %s2867_s25, 4 }
  0x22   : > { %s3012_s12 = scalar_select %p72_p11, %s2835_s17, %s74_s5  }
  0x23   : > { %s4188_s11 = scalar_select %p3006_p12, 1, 0 }
  0x24   : > { %4190 = sst [smem:[#allocation23_spill]] %s3012_s12  ;;  %s216_s13 = sand.u32 1, %s2867_s25  }
  0x25   : > { %4189 = sst [smem:[#allocation22_spill]] %s4188_s11  ;;  %s218_s14 = sand.u32 1, %s2835_s17  }
  0x26   : > { %s3016_s27 = sshll.u32 %s218_s14, 6  ;;  %s2339_s30 = sshll.u32 %s2863_s24, 3 }
  0x27   : > { %s2340_s29 = sshll.u32 %s2859_s23, 4  ;;  %s220_s28 = scalar_lea.vmem [#allocation7], %s3016_s27 }
  0x28   : > { %s229_s15 = sshll.u32 %s220_s28, 4  ;;  %s3021_s4 = sadd.s32 %s2340_s29, %s2339_s30  ;;  %s3023_s15 = int_to_ptr.vmem [resolvable:$true] %s229_s15 }
  0x29   : > { %s4158_s9 = sshll.u32 %s3021_s4, 7  ;;  %p3030_p0 = pnand %p4159_p13, %p3002_p10 }
  0x2a   : > { %s4192_s1 = sld [smem:[#allocation24_spill]]  ;;  %s3042_s29 = scalar_lea.sflag [#allocation8], %s216_s13 }
  0x2b   : > { %p4168_p5 = pneg %p3030_p0 }
  0x30   : > { %s3040_s28 = scalar_lea.hbm %s4192_s1, %s4158_s9  ;;  %s2624_s23 = scalar_lea.hbm %s4192_s1, 4096 }
  0x31   : > { %s2619_s10 = scalar_lea.hbm %s3040_s28, 1024  ;;  %p2625_p10 = scmp.lt.u32.totalorder %s3040_s28, %s4192_s1 }
  0x32   : > { %p2620_p4 = scmp.ne.s32.totalorder %s3040_s28, %s2619_s10  ;;  %p2626_p11 = scmp.lt.u32.totalorder %s2624_s23, %s2619_s10 }
  0x33   : > { %p2628_p2 = scmp.lt.u32.totalorder %s2619_s10, %s3040_s28 }
  0x34   : > { %p2622_p6 = pnand %p4168_p5, %p2620_p4  ;;  %p2627_p13 = por %p2626_p11, %p2625_p10 }
  0x36   : > { %p2623_p9 = pneg %p2622_p6  ;;  %p2629_p1 = por %p2628_p2, %p2627_p13 }
  0x38   : > { %p2630_p3 = pnand %p2629_p1, %p2623_p9 }
  0x3a   : > { %2633 = shalt.err (!%p2630_p3)
}
  0x3b   : > { %s2634_s13 = scalar_lea.vmem %s3023_s15, 1024  ;;  %s2869_s12 = smov [#allocation7]  }
  0x3c   : > { %p2635_p4 = scmp.ne.s32.totalorder %s3023_s15, %s2634_s13  ;;  %s2639_s30 = sshll.u32 %s2869_s12, 4  ;;  %s2640_s30 = int_to_ptr.vmem [resolvable:$false] %s2639_s30 }
  0x3d   : > { %s2641_s9 = scalar_lea.vmem %s2640_s30, 2048  ;;  %p2642_p8 = scmp.lt.s32.totalorder %s3023_s15, %s2640_s30 }
  0x3e   : > { %p2637_p6 = pnand %p2635_p4, %p4168_p5  ;;  %p2643_p10 = scmp.lt.s32.totalorder %s2641_s9, %s2634_s13 }
  0x40   : > { %p2638_p12 = pneg %p2637_p6  ;;  %p2644_p11 = por %p2643_p10, %p2642_p8 }
  0x42   : > { %p2645_p2 = pnand %p2644_p11, %p2638_p12 }
  0x44   : > { %2648 = shalt.err (!%p2645_p2)
}
  0x45   : > { %s4166_s10 = smov 128   ;;  %s2871_s23 = smov 8  }
  0x46   : > { %2476 = dma.hbm_to_vmem [thread:$0]  (!%p3030_p0), %s3040_s28, 1024, %s3023_s15, %s3042_s29, %s4166_s10, %s4166_s10, %s2871_s23  }
  0x47   : > { %s4193_s14 = sshll.u32 %s3021_s4, 7  ;;  %p2346_p1 = scmp.ge.s32.totalorder %s2867_s25, 1 }
  0x48   : > { %s3078_s30 = scalar_lea.hbm %s4150_s2, %s4193_s14  ;;  %s243_s9 = scalar_lea.vmem [#allocation9], %s3016_s27 }
  0x49   : > { %s252_s1 = sshll.u32 %s243_s9, 4  ;;  %p260_p8 = scmp.lt.s32.totalorder %s2867_s25, 5  ;;  %s3118_s1 = int_to_ptr.vmem [resolvable:$true] %s252_s1 }
  0x4a   : > { %s46_s11 = sadd.s32 1, %s2847_s20  ;;  %p4195_p13 = scmp.eq.s32.totalorder %s2997_s8, 0 }
  0x4b   : > { %p3083_p12 = pnand %p2346_p1, %p260_p8  ;;  %p53_p3 = scmp.ne.s32.totalorder %s2847_s20, %s2843_s19 }
  0x4c   : > { %s3091_s3 = scalar_select %p4195_p13, %s2847_s20, %s46_s11  }
  0x4d   : > { %s4194_s17 = scalar_select %p3083_p12, 1, 0 }
  0x4e   : > { %p59_p9 = scmp.ne.s32.totalorder %s2843_s19, %s2839_s18  ;;  %s195_s4 = sand.u32 1, %s2847_s20  }
  0x4f   : > { %s2427_s15 = sshll.u32 %s2863_s24, 10  ;;  %p4196_p4 = scmp.eq.s32.totalorder %s2867_s25, 0 }
  0x50   : > { %p4197_p10 = scmp.eq.s32.totalorder %s2965_s26, 0  ;;  %s2335_s28 = sshll.u32 %s195_s4, 6 }
  0x51   : > { %p55_p6 = por %p4196_p4, %p53_p3  ;;  %s3110_s12 = scalar_lea.hbm %s4148_s0, %s2427_s15 }
  0x52   : > { %p3103_p11 = por %p4197_p10, %p59_p9  ;;  %s199_s18 = scalar_lea.vmem [#allocation4], %s2335_s28 }
  0x53   : > { %s206_s8 = sshll.u32 %s199_s18, 4  ;;  %p4199_p2 = scmp.lt.s32.totalorder %s2867_s25, 4  ;;  %s3120_s8 = int_to_ptr.vmem [resolvable:$true] %s206_s8 }
  0x54   : > { %s4198_s27 = scalar_select %p3103_p11, 1, 0 }
  0x55   : > { %p3114_p1 = pnand %p4199_p2, %p55_p6  ;;  %s3122_s9 = scalar_lea.sflag [#allocation5], %s195_s4 }
  0x56   : > { %s2649_s15 = scalar_lea.hbm %s3110_s12, 1024  ;;  %s2654_s13 = scalar_lea.hbm %s4148_s0, 2048 }
  0x57   : > { %p2650_p8 = scmp.ne.s32.totalorder %s3110_s12, %s2649_s15  ;;  %p2651_p13 = pneg %p3114_p1 }
  0x58   : > { %p2655_p4 = scmp.lt.u32.totalorder %s3110_s12, %s4148_s0  ;;  %p2656_p6 = scmp.lt.u32.totalorder %s2654_s13, %s2649_s15 }
  0x59   : > { %p2652_p3 = pnand %p2651_p13, %p2650_p8  ;;  %p2658_p2 = scmp.lt.u32.totalorder %s2649_s15, %s3110_s12 }
  0x5a   : > { %p2657_p10 = por %p2656_p6, %p2655_p4 }
  0x5b   : > { %p2653_p9 = pneg %p2652_p3 }
  0x5c   : > { %p2659_p5 = por %p2658_p2, %p2657_p10 }
  0x5e   : > { %p2660_p7 = pnand %p2659_p5, %p2653_p9 }
  0x60   : > { %2663 = shalt.err (!%p2660_p7)
}
  0x61   : > { %s2664_s4 = scalar_lea.vmem %s3120_s8, 1024  ;;  %s2872_s28 = smov [#allocation4]  }
  0x62   : > { %p2665_p8 = scmp.ne.s32.totalorder %s3120_s8, %s2664_s4  ;;  %s2669_s14 = sshll.u32 %s2872_s28, 4  ;;  %s2670_s14 = int_to_ptr.vmem [resolvable:$false] %s2669_s14 }
  0x63   : > { %s2671_s10 = scalar_lea.vmem %s2670_s14, 2048  ;;  %p2672_p12 = scmp.lt.s32.totalorder %s3120_s8, %s2670_s14 }
  0x64   : > { %p2667_p3 = pnand %p2665_p8, %p2651_p13  ;;  %p2673_p4 = scmp.lt.s32.totalorder %s2671_s10, %s2664_s4 }
  0x66   : > { %p2668_p11 = pneg %p2667_p3  ;;  %p2674_p6 = por %p2673_p4, %p2672_p12 }
  0x68   : > { %p2675_p10 = pnand %p2674_p6, %p2668_p11 }
  0x6a   : > { %2678 = shalt.err (!%p2675_p10)
}
  0x6b   : > { %s4201_s15 = smov 128   ;;  %s2679_s13 = scalar_lea.hbm %s3078_s30, 1024 }
  0x6c   : > { %2473 = dma.hbm_to_vmem [thread:$0]  (!%p3114_p1), %s3110_s12, 1024, %s3120_s8, %s3122_s9, %s4201_s15, %s4201_s15, %s2871_s23  }
  0x6d   : > { %p2680_p7 = scmp.ne.s32.totalorder %s3078_s30, %s2679_s13  ;;  %p4202_p5 = pneg %p3030_p0 }
  0x6e   : > { %s2684_s4 = scalar_lea.hbm %s4150_s2, 4096  ;;  %p2685_p13 = scmp.lt.u32.totalorder %s3078_s30, %s4150_s2 }
  0x6f   : > { %p2682_p12 = pnand %p2680_p7, %p4202_p5  ;;  %p2686_p9 = scmp.lt.u32.totalorder %s2684_s4, %s2679_s13 }
  0x70   : > { %p2688_p8 = scmp.lt.u32.totalorder %s2679_s13, %s3078_s30 }
  0x71   : > { %p2683_p11 = pneg %p2682_p12  ;;  %p2687_p2 = por %p2686_p9, %p2685_p13 }
  0x73   : > { %p2689_p3 = por %p2688_p8, %p2687_p2 }
  0x75   : > { %p2690_p4 = pnand %p2689_p3, %p2683_p11 }
  0x77   : > { %2693 = shalt.err (!%p2690_p4)
}
  0x78   : > { %s2694_s12 = scalar_lea.vmem %s3118_s1, 1024  ;;  %p4203_p6 = pmov %p4202_p5 }
  0x79   : > { %p2695_p1 = scmp.ne.s32.totalorder %s3118_s1, %s2694_s12  ;;  %s2873_s8 = smov [#allocation9]  }
  0x7a   : > { %s2699_s9 = sshll.u32 %s2873_s8, 4  ;;  %s2700_s9 = int_to_ptr.vmem [resolvable:$false] %s2699_s9 }
  0x7b   : > { %p2697_p10 = pnand %p2695_p1, %p4203_p6  ;;  %s2701_s10 = scalar_lea.vmem %s2700_s9, 2048 }
  0x7c   : > { %p2702_p5 = scmp.lt.s32.totalorder %s3118_s1, %s2700_s9  ;;  %p2703_p12 = scmp.lt.s32.totalorder %s2701_s10, %s2694_s12 }
  0x7d   : > { %p2698_p7 = pneg %p2697_p10 }
  0x7e   : > { %p2704_p13 = por %p2703_p12, %p2702_p5 }
  0x80   : > { %p2705_p9 = pnand %p2704_p13, %p2698_p7 }
  0x82   : > { %2708 = shalt.err (!%p2705_p9)
}
  0x83   : > { %2479 = dma.hbm_to_vmem [thread:$0]  (!%p3030_p0), %s3078_s30, 1024, %s3118_s1, %s3042_s29, %s4201_s15, %s4201_s15, %s2871_s23  }
  0x84   : > { %p4204_p11 = scmp.ne.s32.totalorder %s4194_s17, 0 }
  0x85   : > { %s266_s13 = sand.u32 (!%p4204_p11), 1, %s2843_s19   ;;  %p4205_p2 = scmp.ne.s32.totalorder (!%p4204_p11), %s4198_s27, 0 }
  0x86   : > { %264 = sbr.rel (%p4204_p11) target bundleno = 450 (0x1c2), region = 32  ;;  %s2347_s18 = sshll.u32 (!%p4204_p11), %s266_s13, 6 }
  0x87   : > { %s267_s11 = scalar_lea.sflag (!%p4204_p11), [#allocation5], %s266_s13  ;;  %s3183_s4 = scalar_lea.vmem (!%p4204_p11), [#allocation4], %s2347_s18 }
  0x8d   : > { %2810 = dma.done.wait (%p4205_p2), %s267_s11, 1024  }
  0x8e   : > { %2812 = vsyncadd (%p4205_p2), %s267_s11, 4294966272  ;;  %s275_s5 = sand.u32 1, %s2965_s26   ;;  %s3191_s1 = sand.u32 1, %s2831_s16  }
  0x8f   : > { %s2348_s17 = sshll.u32 %s3191_s1, 6  ;;  %s276_s29 = scalar_lea.sflag [#allocation8], %s275_s5 }
  0x90   : > { %s3194_s23 = scalar_lea.vmem [#allocation7], %s2348_s17  ;;  %p4206_p0 = scmp.ne.s32.totalorder %s4185_s6, 0 }
  0x92   : > { %2814 = dma.done.wait (%p4206_p0), %s276_s29, 2048  }
  0x93   : > { %2816 = vsyncadd (%p4206_p0), %s276_s29, 4294965248  ;;  %s3200_s30 = scalar_lea.vmem [#allocation9], %s2348_s17  ;;  %s3202_s27 = scalar_lea.vmem [#allocation10], %s2348_s17 }
  0x94   : > { %s3204_s15 = scalar_lea.vmem [#allocation11], %s2348_s17  ;;  %p2352_p8 = scmp.ne.s32.totalorder %s2851_s21, 0 }
  0x95   : > { %v337_v0 = vld [vmem:[%s3183_s4] sm:$0xff] (!%p2352_p8)  ;;  %v338_v1 = vld [vmem:[%s3183_s4 + $0x8] sm:$0xff] (!%p2352_p8)  ;;  %v339_v8 = vld [vmem:[%s3183_s4 + $0x10] sm:$0xff] (!%p2352_p8)  ;;  %v2874_v31 = vmov (!%p2352_p8), 683565275  }
  0x96   : > { %336 = sbr.rel (%p2352_p8) target bundleno = 394 (0x18a), region = 48  ;;  %v3209_v2 = vmul.f32 (!%p2352_p8), 6.2831855, %v337_v0  ;;  %v3211_v3 = vmul.f32 (!%p2352_p8), 6.2831855, %v338_v1 }
  0x97   : > { %v3222_v14 = vmul.f32 (!%p2352_p8), 6.2831855, %v339_v8  ;;  %v2875_v33 = vmov (!%p2352_p8), 2475754826   ;;  %v2876_v35 = vmov (!%p2352_p8), 2131351028  }
  0x98   : > { %v353_v4 = vand.u32 (!%p2352_p8), 2147483647, %v3209_v2  ;;  %v356_v5 = vand.u32 (!%p2352_p8), 2139095040, %v3209_v2  ;;  %v456_v6 = vand.u32 (!%p2352_p8), 2147483647, %v3211_v3  ;;  %v459_v7 = vand.u32 (!%p2352_p8), 2139095040, %v3211_v3 }
  0x99   : > { %v562_v20 = vand.u32 (!%p2352_p8), 2139095040, %v3222_v14  ;;  %v2877_v37 = vmov (!%p2352_p8), 2102212464   ;;  %v2878_v39 = vmov (!%p2352_p8), 920167782  }
  0x9a   : > { %v357_v9 = vshrl.u32 (!%p2352_p8), %v356_v5, 23  ;;  %v360_v10 = vand.u32 (!%p2352_p8), 8388607, %v353_v4  ;;  %v460_v11 = vshrl.u32 (!%p2352_p8), %v459_v7, 23  ;;  %v463_v12 = vand.u32 (!%p2352_p8), 8388607, %v456_v6 }
  0x9b   : > { %v563_v22 = vshrl.u32 (!%p2352_p8), %v562_v20, 23  ;;  %v2879_v47 = vmov (!%p2352_p8), 1326507024  }
  0x9c   : > { %v2353_v13 = vadd.s32 (!%p2352_p8), 4294967169, %v357_v9  ;;  %v2357_v15 = vadd.s32 (!%p2352_p8), 4294967169, %v460_v11  ;;  %v361_v17 = vor.u32 (!%p2352_p8), 8388608, %v360_v10  ;;  %v464_v18 = vor.u32 (!%p2352_p8), 8388608, %v463_v12 }
  0x9d   : > { %v3236_v41 = vadd.s32 4294967169, %v563_v22 }
  0x9e   : > { %v363_v16 = vadd.s32 1, %v2353_v13  ;;  %v466_v19 = vadd.s32 1, %v2357_v15  ;;  %v3225_v26 = vshll.u32 %v361_v17, 8  ;;  %v3229_v29 = vshll.u32 %v464_v18, 8 }
  0xa0   : > { %vm364_vm0 = vcmp.gt.s32.totalorder %v363_v16, 0  ;;  %vm467_vm1 = vcmp.gt.s32.totalorder %v466_v19, 0 }
  0xa1   : > { %v365_v21 = vsel %vm364_vm0, %v363_v16, 0  ;;  %v468_v25 = vsel %vm467_vm1, %v466_v19, 0 }
  0xa2   : > { %v366_v23 = vshrl.u32 %v365_v21, 5  ;;  %v367_v24 = vand.u32 31, %v365_v21  ;;  %v3227_v27 = vshrl.u32 %v468_v25, 5  ;;  %v470_v28 = vand.u32 31, %v468_v25 }
  0xa4   : > { %v368_v30 = vsub.s32 32, %v367_v24  ;;  %v370_v32 = vshll.u32 %v2874_v31, %v367_v24  ;;  %v373_v34 = vshll.u32 %v2875_v33, %v367_v24  ;;  %v376_v36 = vshll.u32 %v2876_v35, %v367_v24 }
  0xa5   : > { %v379_v38 = vshll.u32 %v2877_v37, %v367_v24  ;;  %v382_v40 = vshll.u32 %v2878_v39, %v367_v24  ;;  %vm385_vm2 = vcmp.lt.s32.totalorder %v366_v23, 1  ;;  %vm386_vm3 = vcmp.lt.s32.totalorder %v366_v23, 2 }
  0xa6   : > { %v369_v42 = vshrl.u32 %v2874_v31, %v368_v30  ;;  %v371_v43 = vshrl.u32 %v2875_v33, %v368_v30  ;;  %v374_v44 = vshrl.u32 %v2876_v35, %v368_v30  ;;  %v377_v45 = vshrl.u32 %v2877_v37, %v368_v30 }
  0xa7   : > { %v380_v46 = vshrl.u32 %v2878_v39, %v368_v30  ;;  %v383_v48 = vshrl.u32 %v2879_v47, %v368_v30  ;;  %vm388_vm4 = vcmp.lt.s32.totalorder %v366_v23, 4  ;;  %v471_v52 = vsub.s32 32, %v470_v28 }
  0xa8   : > { %v372_v49 = vor.u32 %v371_v43, %v370_v32  ;;  %v375_v50 = vor.u32 %v374_v44, %v373_v34  ;;  %v378_v51 = vor.u32 %v377_v45, %v376_v36  ;;  %vm387_vm5 = vcmp.lt.s32.totalorder %v366_v23, 3 }
  0xa9   : > { %v381_v53 = vor.u32 %v380_v46, %v379_v38  ;;  %v384_v54 = vor.u32 %v383_v48, %v382_v40  ;;  %v473_v55 = vshll.u32 %v2874_v31, %v470_v28  ;;  %v476_v63 = vshll.u32 %v2875_v33, %v470_v28 }
  0xaa   : > { %v389_v56 = vsel %vm385_vm2, %v369_v42, %v372_v49  ;;  %v390_v57 = vsel %vm388_vm4, %v378_v51, 2102212464  ;;  %v393_v58 = vsel %vm385_vm2, %v372_v49, %v375_v50  ;;  %v397_v59 = vsel %vm385_vm2, %v375_v50, %v378_v51 }
  0xab   : > { %v391_v60 = vsel %vm387_vm5, %v375_v50, %v390_v57  ;;  %v394_v61 = vsel %vm388_vm4, %v381_v53, 920167782  ;;  %v398_v62 = vsel %vm388_vm4, %v384_v54, 1326507024  ;;  %v472_v5 = vshrl.u32 %v2874_v31, %v471_v52 }
  0xac   : > { %v395_v0 = vsel %vm387_vm5, %v378_v51, %v394_v61  ;;  %v399_v1 = vsel %vm387_vm5, %v381_v53, %v398_v62  ;;  %v474_v7 = vshrl.u32 %v2875_v33, %v471_v52  ;;  %v392_v8 = vsel %vm386_vm3, %v389_v56, %v391_v60 }
  0xad   : > { %v396_v9 = vsel %vm386_vm3, %v393_v58, %v395_v0  ;;  %v400_v10 = vsel %vm386_vm3, %v397_v59, %v399_v1  ;;  %v477_v11 = vshrl.u32 %v2876_v35, %v471_v52  ;;  %v479_v19 = vshll.u32 %v2876_v35, %v470_v28  ;;  %v340_v0 = vld [vmem:[%s3183_s4 + $0x18] sm:$0xff] }
  0xae   : > { %v3256_v12 = vmul.u32.u64.low %v3225_v26, %v400_v10  ;;  %v3257_v13 = vmul.u32.u64.high %v3225_v26, %v400_v10, %v3256_v12  ;;  %v3260_v15 = vmul.u32.u64.low %v3225_v26, %v396_v9  ;;  %v3261_v16 = vmul.u32.u64.high %v3225_v26, %v396_v9, %v3260_v15 }
  0xaf   : > { %v475_v17 = vor.u32 %v474_v7, %v473_v55  ;;  %v478_v18 = vor.u32 %v477_v11, %v476_v63  ;;  %v480_v20 = vshrl.u32 %v2877_v37, %v471_v52  ;;  %v482_v21 = vshll.u32 %v2877_v37, %v470_v28 }
  0xb0   : > { %v483_v22 = vshrl.u32 %v2878_v39, %v471_v52  ;;  %v485_v23 = vshll.u32 %v2878_v39, %v470_v28  ;;  %v486_v24 = vshrl.u32 %v2879_v47, %v471_v52  ;;  %v408_v25 = vmul.u32 %v3225_v26, %v392_v8 }
  0xb1   : > { %v481_v30 = vor.u32 %v480_v20, %v479_v19  ;;  %vm488_vm6 = vcmp.lt.s32.totalorder %v3227_v27, 1  ;;  %vm489_vm7 = vcmp.lt.s32.totalorder %v3227_v27, 2  ;;  %vm410_vm8 = vc.u32 %v3257_v13, %v3260_v15 }
  0xb2   : > { %v411_v32 = vadd.s32 1, %v3261_v16  ;;  %v484_v34 = vor.u32 %v483_v22, %v482_v21  ;;  %vm490_vm9 = vcmp.lt.s32.totalorder %v3227_v27, 3  ;;  %v487_v36 = vor.u32 %v486_v24, %v485_v23 }
  0xb3   : > { %vm491_vm10 = vcmp.lt.s32.totalorder %v3227_v27, 4  ;;  %v492_v28 = vsel %vm488_vm6, %v472_v5, %v475_v17  ;;  %v496_v38 = vsel %vm488_vm6, %v475_v17, %v478_v18  ;;  %v500_v43 = vsel %vm488_vm6, %v478_v18, %v481_v30 }
  0xb4   : > { %v412_v26 = vsel %vm410_vm8, %v411_v32, %v3261_v16  ;;  %v493_v40 = vsel %vm491_vm10, %v481_v30, 2102212464  ;;  %v497_v42 = vsel %vm491_vm10, %v484_v34, 920167782  ;;  %v501_v48 = vsel %vm491_vm10, %v487_v36, 1326507024 }
  0xb5   : > { %v413_v44 = vadd.s32 %v412_v26, %v408_v25  ;;  %v494_v45 = vsel %vm490_vm9, %v478_v18, %v493_v40  ;;  %v498_v46 = vsel %vm490_vm9, %v481_v30, %v497_v42  ;;  %v502_v51 = vsel %vm490_vm9, %v484_v34, %v501_v48 }
  0xb6   : > { %v495_v49 = vsel %vm489_vm7, %v492_v28, %v494_v45  ;;  %v499_v50 = vsel %vm489_vm7, %v496_v38, %v498_v46  ;;  %v569_v52 = vadd.s32 1, %v3236_v41  ;;  %v503_v54 = vsel %vm489_vm7, %v500_v43, %v502_v51  ;;  %v341_v51 = vld [vmem:[%s3183_s4 + $0x20] sm:$0xff] }
  0xb7   : > { %v414_v53 = vadd.s32 536870912, %v413_v44  ;;  %v3287_v55 = vmul.u32.u64.low %v3229_v29, %v499_v50  ;;  %v3288_v56 = vmul.u32.u64.high %v3229_v29, %v499_v50, %v3287_v55  ;;  %v559_v60 = vand.u32 2147483647, %v3222_v14 }
  0xb8   : > { %v3292_v57 = vmul.u32.u64.low %v3229_v29, %v503_v54  ;;  %v3293_v58 = vmul.u32.u64.high %v3229_v29, %v503_v54, %v3292_v57  ;;  %vm570_vm11 = vcmp.gt.s32.totalorder %v569_v52, 0  ;;  %v511_v41 = vmul.u32 %v3229_v29, %v495_v49 }
  0xb9   : > { %v3295_v59 = vshrl.u32 %v414_v53, 30  ;;  %v571_v61 = vsel %vm570_vm11, %v569_v52, 0  ;;  %v514_v63 = vadd.s32 1, %v3288_v56  ;;  %v566_v8 = vand.u32 8388607, %v559_v60 }
  0xba   : > { %v573_v62 = vand.u32 31, %v571_v61  ;;  %vm513_vm12 = vc.u32 %v3293_v58, %v3287_v55  ;;  %v3309_v10 = vmul.f32 6.2831855, %v340_v0  ;;  %v572_v23 = vshrl.u32 %v571_v61, 5 }
  0xbb   : > { %v416_v27 = vshll.u32 %v3295_v59, 30  ;;  %v515_v7 = vsel %vm513_vm12, %v514_v63, %v3288_v56  ;;  %v567_v22 = vor.u32 8388608, %v566_v8  ;;  %v409_v25 = vadd.s32 %v3260_v15, %v3257_v13 }
  0xbc   : > { %v574_v1 = vsub.s32 32, %v573_v62  ;;  %v516_v9 = vadd.s32 %v515_v7, %v511_v41  ;;  %v576_v11 = vshll.u32 %v2874_v31, %v573_v62  ;;  %v579_v16 = vshll.u32 %v2875_v33, %v573_v62 }
  0xbd   : > { %v3304_v5 = vsub.s32 %v413_v44, %v416_v27  ;;  %v582_v19 = vshll.u32 %v2876_v35, %v573_v62  ;;  %v585_v24 = vshll.u32 %v2877_v37, %v573_v62  ;;  %v665_v34 = vand.u32 2139095040, %v3309_v10 }
  0xbe   : > { %v577_v12 = vshrl.u32 %v2875_v33, %v574_v1  ;;  %v517_v17 = vadd.s32 536870912, %v516_v9  ;;  %v580_v18 = vshrl.u32 %v2876_v35, %v574_v1  ;;  %v583_v20 = vshrl.u32 %v2877_v37, %v574_v1 }
  0xbf   : > { %v419_v29 = vsub.s32 0, %v3304_v5  ;;  %v586_v32 = vshrl.u32 %v2878_v39, %v574_v1  ;;  %v575_v28 = vshrl.u32 %v2874_v31, %v574_v1  ;;  %v588_v38 = vshll.u32 %v2878_v39, %v573_v62 }
  0xc0   : > { %v3322_v30 = vshrl.u32 %v517_v17, 30  ;;  %v589_v26 = vshrl.u32 %v2879_v47, %v574_v1  ;;  %v578_v42 = vor.u32 %v577_v12, %v576_v11  ;;  %v581_v43 = vor.u32 %v580_v18, %v579_v16 }
  0xc1   : > { %v2354_v21 = vmin.u32 %v419_v29, %v3304_v5  ;;  %v584_v44 = vor.u32 %v583_v20, %v582_v19  ;;  %v587_v15 = vor.u32 %v586_v32, %v585_v24  ;;  %vm591_vm13 = vcmp.lt.s32.totalorder %v572_v23, 1 }
  0xc2   : > { %v519_v40 = vshll.u32 %v3322_v30, 30  ;;  %vm594_vm14 = vcmp.lt.s32.totalorder %v572_v23, 4  ;;  %vm592_vm15 = vcmp.lt.s32.totalorder %v572_v23, 2  ;;  %v666_v48 = vshrl.u32 %v665_v34, 23 }
  0xc3   : > { %v421_v36 = vclz %v2354_v21  ;;  %v596_v46 = vsel %vm594_vm14, %v584_v44, 2102212464  ;;  %v590_v49 = vor.u32 %v589_v26, %v588_v38  ;;  %vm593_vm1 = vcmp.lt.s32.totalorder %v572_v23, 3 }
  0xc4   : > { %v3330_v45 = vsub.s32 %v516_v9, %v519_v40  ;;  %v595_v50 = vsel %vm591_vm13, %v575_v28, %v578_v42  ;;  %v597_v54 = vsel %vm593_vm1, %v581_v43, %v596_v46  ;;  %v599_v56 = vsel %vm591_vm13, %v578_v42, %v581_v43 }
  0xc5   : > { %v2355_v13 = vadd.s32 4294967294, %v421_v36  ;;  %v600_v62 = vsel %vm594_vm14, %v587_v15, 920167782  ;;  %vm355_vm2 = vcmp.lt.s32.totalorder %v3209_v2, 0  ;;  %v439_v27 = vsub.s32 4, %v3295_v59 }
  0xc6   : > { %v522_v53 = vsub.s32 0, %v3330_v45  ;;  %v607_v0 = vshll.u32 %v567_v22, 8  ;;  %v3343_v1 = vmul.f32 6.2831855, %v341_v51  ;;  %v601_v9 = vsel %vm593_vm1, %v584_v44, %v600_v62 }
  0xc7   : > { %vm2356_vm0 = vcmp.lt.s32.totalorder %v2355_v13, 0  ;;  %v603_v29 = vsel %vm591_vm13, %v581_v43, %v584_v44  ;;  %vm458_vm3 = vcmp.lt.s32.totalorder %v3211_v3, 0  ;;  %v598_v11 = vsel %vm592_vm15, %v595_v50, %v597_v54 }
  0xc8   : > { %v424_v52 = vsel %vm2356_vm0, 0, %v2355_v13  ;;  %v2358_v63 = vmin.u32 %v522_v53, %v3330_v45  ;;  %v602_v12 = vsel %vm592_vm15, %v599_v56, %v601_v9  ;;  %v604_v16 = vsel %vm594_vm14, %v590_v49, 1326507024 }
  0xc9   : > { %v425_v57 = vsub.s32 32, %v424_v52  ;;  %v426_v61 = vshll.u32 %v3304_v5, %v424_v52  ;;  %v429_v41 = vsub.s32 4294967266, %v424_v52  ;;  %vm3353_vm4 = vcmp.le.f32.partialorder %v353_v4, 0.7853982 }
  0xca   : > { %v524_v5 = vclz %v2358_v63  ;;  %v605_v20 = vsel %vm593_vm1, %v587_v15, %v604_v16  ;;  %v2365_v21 = vadd.s32 4294967169, %v666_v48  ;;  %vm3365_vm5 = vcmp.le.f32.partialorder %v456_v6, 0.7853982 }
  0xcb   : > { %v427_v7 = vshrl.u32 %v409_v25, %v425_v57  ;;  %v430_v8 = vadd.s32 127, %v429_v41  ;;  %v606_v24 = vsel %vm592_vm15, %v603_v29, %v605_v20  ;;  %v512_v26 = vadd.s32 %v3287_v55, %v3293_v58 }
  0xcc   : > { %v2359_v22 = vadd.s32 4294967294, %v524_v5  ;;  %v3359_v25 = vmul.u32.u64.low %v607_v0, %v602_v12  ;;  %v3360_v32 = vmul.u32.u64.high %v607_v0, %v602_v12, %v3359_v25  ;;  %v662_v23 = vand.u32 2147483647, %v3309_v10 }
  0xcd   : > { %v428_v18 = vor.u32 %v427_v7, %v426_v61  ;;  %v431_v19 = vshll.u32 %v430_v8, 23  ;;  %v3369_v28 = vmul.u32.u64.low %v607_v0, %v606_v24  ;;  %v3370_v38 = vmul.u32.u64.high %v607_v0, %v606_v24, %v3369_v28 }
  0xce   : > { %vm2360_vm6 = vcmp.lt.s32.totalorder %v2359_v22, 0  ;;  %v672_v40 = vadd.s32 1, %v2365_v21  ;;  %v542_v44 = vsub.s32 4, %v3322_v30  ;;  %v614_v13 = vmul.u32 %v607_v0, %v598_v11 }
  0xcf   : > { %v432_v34 = vor.u32 4788187, %v431_v19  ;;  %v435_v36 = vcvt.s32.f32 %v428_v18  ;;  %v527_v43 = vsel %vm2360_vm6, 0, %v2359_v22  ;;  %v617_v48 = vadd.s32 1, %v3360_v32 }
  0xd0   : > { %v528_v15 = vsub.s32 32, %v527_v43  ;;  %v529_v6 = vshll.u32 %v3330_v45, %v527_v43  ;;  %v532_v46 = vsub.s32 4294967266, %v527_v43  ;;  %v440_v55 = vsel %vm355_vm2, %v439_v27, %v3295_v59 }
  0xd1   : > { %v433_v42 = vand.u32 2147483647, %v432_v34  ;;  %vm616_vm7 = vc.u32 %v3370_v38, %v3359_v25  ;;  %vm673_vm8 = vcmp.gt.s32.totalorder %v672_v40, 0  ;;  %v543_v45 = vsel %vm458_vm3, %v542_v44, %v3322_v30 }
  0xd2   : > { %v530_v58 = vshrl.u32 %v512_v26, %v528_v15  ;;  %v533_v50 = vadd.s32 127, %v532_v46  ;;  %v618_v51 = vsel %vm616_vm7, %v617_v48, %v3360_v32  ;;  %v674_v52 = vsel %vm673_vm8, %v672_v40, 0 }
  0xd3   : > { %v436_v49 = vmul.f32 %v435_v36, %v433_v42  ;;  %v619_v54 = vadd.s32 %v618_v51, %v614_v13  ;;  %v676_v56 = vand.u32 31, %v674_v52  ;;  %v3389_v57 = vsel %vm3353_vm4, 0, %v440_v55 }
  0xd4   : > { %v531_v59 = vor.u32 %v530_v58, %v529_v6  ;;  %v534_v61 = vshll.u32 %v533_v50, 23  ;;  %v3393_v41 = vand.u32 8388607, %v662_v23  ;;  %v3398_v27 = vand.u32 3, %v3389_v57 }
  0xd5   : > { %v437_v53 = vxor.u32 2147483648, %v436_v49  ;;  %v620_v63 = vadd.s32 536870912, %v619_v54  ;;  %v677_v30 = vsub.s32 32, %v676_v56  ;;  %v3405_v9 = vsel %vm3365_vm5, 0, %v543_v45 }
  0xd6   : > { %v535_v7 = vor.u32 4788187, %v534_v61  ;;  %v538_v8 = vcvt.s32.f32 %v531_v59  ;;  %v3408_v29 = vand.u32 3, %v3405_v9  ;;  %v679_v11 = vshll.u32 %v2874_v31, %v676_v56 }
  0xd7   : > { %v438_v62 = vsel %vm355_vm2, %v437_v53, %v436_v49  ;;  %v3410_v5 = vshrl.u32 %v620_v63, 30  ;;  %v680_v16 = vshrl.u32 %v2875_v33, %v677_v30  ;;  %v682_v17 = vshll.u32 %v2875_v33, %v676_v56 }
  0xd8   : > { %v441_v0 = vsel %vm3353_vm4, %v3209_v2, %v438_v62  ;;  %v536_v12 = vand.u32 2147483647, %v535_v7  ;;  %vm451_vm9 = vcmp.eq.s32.totalorder %v3398_v27, 2  ;;  %v683_v19 = vshrl.u32 %v2876_v35, %v677_v30 }
  0xd9   : > { %2587 = vcosq.f32 %v441_v0  ;;  %v622_v18 = vshll.u32 %v3410_v5, 30  ;;  %v685_v20 = vshll.u32 %v2876_v35, %v676_v56  ;;  %v686_v21 = vshrl.u32 %v2877_v37, %v677_v30 }
  0xda   : > { %2589 = vsinq.f32 %v441_v0  ;;  %vm448_vm10 = vcmp.eq.s32.totalorder %v3398_v27, 0  ;;  %v539_v22 = vmul.f32 %v538_v8, %v536_v12  ;;  %v675_v24 = vshrl.u32 %v674_v52, 5 }
  0xdb   : > { %v688_v32 = vshll.u32 %v2877_v37, %v676_v56  ;;  %v689_v34 = vshrl.u32 %v2878_v39, %v677_v30  ;;  %vm447_vm11 = vcmp.lt.s32.totalorder %v3398_v27, 2  ;;  %v3424_v36 = vsub.s32 %v619_v54, %v622_v18 }
  0xdc   : > { %v670_v28 = vor.u32 8388608, %v3393_v41  ;;  %v691_v26 = vshll.u32 %v2878_v39, %v676_v56  ;;  %v768_v40 = vand.u32 2139095040, %v3343_v1  ;;  %vm445_vm12 = vweird.f32 %v3209_v2 }
  0xdd   : > { %v540_v42 = vxor.u32 2147483648, %v539_v22  ;;  %v615_v43 = vadd.s32 %v3359_v25, %v3370_v38  ;;  %v678_v44 = vshrl.u32 %v2874_v31, %v677_v30  ;;  %v692_v13 = vshrl.u32 %v2879_v47, %v677_v30 }
  0xde   : > { %v625_v15 = vsub.s32 0, %v3424_v36  ;;  %v681_v6 = vor.u32 %v680_v16, %v679_v11  ;;  %v684_v46 = vor.u32 %v683_v19, %v682_v17  ;;  %v687_v48 = vor.u32 %v686_v21, %v685_v20 }
  0xdf   : > { %v541_v49 = vsel %vm458_vm3, %v540_v42, %v539_v22  ;;  %v690_v55 = vor.u32 %v689_v34, %v688_v32  ;;  %vm694_vm13 = vcmp.lt.s32.totalorder %v675_v24, 1  ;;  %vm695_vm14 = vcmp.lt.s32.totalorder %v675_v24, 2 }
  0xe0   : > { %v544_v58 = vsel %vm3365_vm5, %v3211_v3, %v541_v49  ;;  %v2362_v25 = vmin.u32 %v625_v15, %v3424_v36  ;;  %v693_v38 = vor.u32 %v692_v13, %v691_v26  ;;  %vm697_vm15 = vcmp.lt.s32.totalorder %v675_v24, 4 }
  0xe1   : > { %2591 = vcosq.f32 %v544_v58  ;;  %vm696_vm0 = vcmp.lt.s32.totalorder %v675_v24, 3  ;;  %v698_v50 = vsel %vm694_vm13, %v678_v44, %v681_v6  ;;  %v699_v51 = vsel %vm697_vm15, %v687_v48, 2102212464 }
  0xe2   : > { %2593 = vsinq.f32 %v544_v58  ;;  %v627_v53 = vclz %v2362_v25  ;;  %v700_v45 = vsel %vm696_vm0, %v684_v46, %v699_v51  ;;  %v702_v54 = vsel %vm694_vm13, %v681_v6, %v684_v46 }
  0xe3   : > { %v3443_v52 = vpop.eup %2587  ;;  %v703_v59 = vsel %vm697_vm15, %v690_v55, 920167782  ;;  %v706_v61 = vsel %vm694_vm13, %v684_v46, %v687_v48  ;;  %v710_v41 = vshll.u32 %v670_v28, 8  ;;  %v707_v0 = vsel %vm697_vm15, %v693_v38, 1326507024 }
  0xe4   : > { %v3447_v4 = vpop.eup %2589  ;;  %v452_v56 = vxor.u32 2147483648, %v3443_v52  ;;  %v2363_v63 = vadd.s32 4294967294, %v627_v53  ;;  %v704_v30 = vsel %vm696_vm0, %v687_v48, %v703_v59  ;;  %v701_v8 = vsel %vm695_vm14, %v698_v50, %v700_v45 }
  0xe5   : > { %v449_v62 = vxor.u32 2147483648, %v3447_v4  ;;  %v705_v11 = vsel %vm695_vm14, %v702_v54, %v704_v30  ;;  %v708_v12 = vsel %vm696_vm0, %v690_v55, %v707_v0  ;;  %v769_v18 = vshrl.u32 %v768_v40, 23 }
  0xe6   : > { %v453_v7 = vsel %vm451_vm9, %v452_v56, %v3447_v4  ;;  %vm2364_vm1 = vcmp.lt.s32.totalorder %v2363_v63, 0  ;;  %v709_v17 = vsel %vm695_vm14, %v706_v61, %v708_v12  ;;  %vm548_vm2 = vweird.f32 %v3211_v3 }
  0xe7   : > { %v450_v16 = vsel %vm448_vm10, %v3443_v52, %v449_v62  ;;  %v630_v20 = vsel %vm2364_vm1, 0, %v2363_v63  ;;  %v3471_v21 = vmul.u32.u64.low %v710_v41, %v709_v17  ;;  %v3472_v22 = vmul.u32.u64.high %v710_v41, %v709_v17, %v3471_v21 }
  0xe8   : > { %v454_v19 = vsel %vm447_vm11, %v450_v16, %v453_v7  ;;  %v631_v34 = vsub.s32 32, %v630_v20  ;;  %v632_v28 = vshll.u32 %v3424_v36, %v630_v20  ;;  %v635_v26 = vsub.s32 4294967266, %v630_v20 }
  0xe9   : > { %v455_v32 = vsel %vm445_vm12, nan, %v454_v19  ;;  %v3477_v42 = vmul.u32.u64.low %v710_v41, %v705_v11  ;;  %v3478_v44 = vmul.u32.u64.high %v710_v41, %v705_v11, %v3477_v42  ;;  %v2369_v24 = vadd.s32 4294967169, %v769_v18  ;;  %v342_v18 = vld [vmem:[%s3183_s4 + $0x28] sm:$0xff] }
  0xea   : > { %1177 = vst [vmem:[#allocation2] sm:$0xff] %v455_v32  ;;  %vm551_vm3 = vcmp.eq.s32.totalorder %v3408_v29, 0  ;;  %v633_v27 = vshrl.u32 %v615_v43, %v631_v34  ;;  %v636_v40 = vadd.s32 127, %v635_v26  ;;  %vm554_vm4 = vcmp.eq.s32.totalorder %v3408_v29, 2 }
  0xeb   : > { %v3483_v13 = vpop.eup %2591  ;;  %vm561_vm5 = vcmp.lt.s32.totalorder %v3222_v14, 0  ;;  %v717_v36 = vmul.u32 %v710_v41, %v701_v8  ;;  %v765_v15 = vand.u32 2147483647, %v3343_v1  ;;  %v775_v6 = vadd.s32 1, %v2369_v24 }
  0xec   : > { %v3488_v46 = vpop.eup %2593  ;;  %v555_v48 = vxor.u32 2147483648, %v3483_v13  ;;  %vm3493_vm6 = vcmp.le.f32.partialorder %v559_v60, 0.7853982  ;;  %v634_v43 = vor.u32 %v633_v27, %v632_v28  ;;  %v637_v55 = vshll.u32 %v636_v40, 23 }
  0xed   : > { %vm719_vm7 = vc.u32 %v3472_v22, %v3477_v42  ;;  %vm550_vm8 = vcmp.lt.s32.totalorder %v3408_v29, 2  ;;  %v552_v58 = vxor.u32 2147483648, %v3488_v46  ;;  %v720_v25 = vadd.s32 1, %v3478_v44 }
  0xee   : > { %vm776_vm9 = vcmp.gt.s32.totalorder %v775_v6, 0  ;;  %v556_v60 = vsel %vm554_vm4, %v555_v48, %v3488_v46  ;;  %v638_v38 = vor.u32 4788187, %v637_v55  ;;  %v641_v50 = vcvt.s32.f32 %v634_v43 }
  0xef   : > { %v777_v51 = vsel %vm776_vm9, %v775_v6, 0  ;;  %v553_v53 = vsel %vm551_vm3, %v3483_v13, %v552_v58  ;;  %v645_v45 = vsub.s32 4, %v3410_v5  ;;  %v721_v54 = vsel %vm719_vm7, %v720_v25, %v3478_v44 }
  0xf0   : > { %v779_v59 = vand.u32 31, %v777_v51  ;;  %v557_v61 = vsel %vm550_vm8, %v553_v53, %v556_v60  ;;  %v639_v41 = vand.u32 2147483647, %v638_v38  ;;  %v722_v63 = vadd.s32 %v721_v54, %v717_v36 }
  0xf1   : > { %v772_v30 = vand.u32 8388607, %v765_v15  ;;  %v558_v0 = vsel %vm548_vm2, nan, %v557_v61  ;;  %v778_v7 = vshrl.u32 %v777_v51, 5  ;;  %v646_v24 = vsel %vm561_vm5, %v645_v45, %v3410_v5 }
  0xf2   : > { %v780_v8 = vsub.s32 32, %v779_v59  ;;  %v782_v29 = vshll.u32 %v2874_v31, %v779_v59  ;;  %1178 = vst [vmem:[#allocation2 + $0x8] sm:$0xff] %v558_v0  ;;  %v642_v11 = vmul.f32 %v641_v50, %v639_v41  ;;  %v723_v12 = vadd.s32 536870912, %v722_v63 }
  0xf3   : > { %v785_v16 = vshll.u32 %v2875_v33, %v779_v59  ;;  %v788_v17 = vshll.u32 %v2876_v35, %v779_v59  ;;  %v791_v32 = vshll.u32 %v2877_v37, %v779_v59  ;;  %v794_v44 = vshll.u32 %v2878_v39, %v779_v59 }
  0xf4   : > { %v783_v19 = vshrl.u32 %v2875_v33, %v780_v8  ;;  %v786_v20 = vshrl.u32 %v2876_v35, %v780_v8  ;;  %v789_v21 = vshrl.u32 %v2877_v37, %v780_v8  ;;  %v643_v34 = vxor.u32 2147483648, %v642_v11 }
  0xf5   : > { %v3526_v28 = vshrl.u32 %v723_v12, 30  ;;  %v792_v26 = vshrl.u32 %v2878_v39, %v780_v8  ;;  %v773_v27 = vor.u32 8388608, %v772_v30  ;;  %v795_v40 = vshrl.u32 %v2879_v47, %v780_v8 }
  0xf6   : > { %v3534_v36 = vmul.f32 6.2831855, %v342_v18  ;;  %v644_v6 = vsel %vm561_vm5, %v643_v34, %v642_v11  ;;  %v784_v55 = vor.u32 %v783_v19, %v782_v29  ;;  %v787_v25 = vor.u32 %v786_v20, %v785_v16 }
  0xf7   : > { %v725_v43 = vshll.u32 %v3526_v28, 30  ;;  %v647_v60 = vsel %vm3493_vm6, %v3222_v14, %v644_v6  ;;  %v790_v38 = vor.u32 %v789_v21, %v788_v17  ;;  %v793_v50 = vor.u32 %v792_v26, %v791_v32 }
  0xf8   : > { %v796_v51 = vor.u32 %v795_v40, %v794_v44  ;;  %2595 = vcosq.f32 %v647_v60  ;;  %v781_v53 = vshrl.u32 %v2874_v31, %v780_v8  ;;  %vm797_vm10 = vcmp.lt.s32.totalorder %v778_v7, 1 }
  0xf9   : > { %v3542_v5 = vsub.s32 %v722_v63, %v725_v43  ;;  %v3547_v45 = vsel %vm3493_vm6, 0, %v646_v24  ;;  %2597 = vsinq.f32 %v647_v60  ;;  %vm800_vm11 = vcmp.lt.s32.totalorder %v778_v7, 4 }
  0xfa   : > { %v813_v54 = vshll.u32 %v773_v27, 8  ;;  %vm798_vm13 = vcmp.lt.s32.totalorder %v778_v7, 2  ;;  %vm799_vm14 = vcmp.lt.s32.totalorder %v778_v7, 3  ;;  %v802_v61 = vsel %vm800_vm11, %v790_v38, 2102212464 }
  0xfb   : > { %v728_v59 = vsub.s32 0, %v3542_v5  ;;  %v805_v41 = vsel %vm797_vm10, %v784_v55, %v787_v25  ;;  %v806_v30 = vsel %vm800_vm11, %v793_v50, 920167782  ;;  %v809_v0 = vsel %vm797_vm10, %v787_v25, %v790_v38 }
  0xfc   : > { %v810_v63 = vsel %vm800_vm11, %v796_v51, 1326507024  ;;  %v652_v29 = vand.u32 3, %v3547_v45  ;;  %v801_v11 = vsel %vm797_vm10, %v781_v53, %v784_v55  ;;  %v803_v49 = vsel %vm799_vm14, %v787_v25, %v802_v61 }
  0xfd   : > { %v2366_v8 = vmin.u32 %v728_v59, %v3542_v5  ;;  %v807_v12 = vsel %vm799_vm14, %v790_v38, %v806_v30  ;;  %v811_v16 = vsel %vm799_vm14, %v793_v50, %v810_v63  ;;  %v871_v17 = vand.u32 2139095040, %v3534_v36 }
  0xfe   : > { %v808_v19 = vsel %vm798_vm13, %v805_v41, %v807_v12  ;;  %v812_v20 = vsel %vm798_vm13, %v809_v0, %v811_v16  ;;  %v804_v24 = vsel %vm798_vm13, %v801_v11, %v803_v49  ;;  %vm651_vm15 = vweird.f32 %v3222_v14 }
  0xff   : > { %v730_v18 = vclz %v2366_v8  ;;  %v3555_v21 = vmul.u32.u64.low %v813_v54, %v812_v20  ;;  %v3556_v32 = vmul.u32.u64.high %v813_v54, %v812_v20, %v3555_v21  ;;  %v872_v27 = vshrl.u32 %v871_v17, 23  ;;  %v343_v17 = vld [vmem:[%s3183_s4 + $0x30] sm:$0xff] }
 0x100   : > { %v3558_v34 = vmul.u32.u64.low %v813_v54, %v808_v19  ;;  %v3559_v26 = vmul.u32.u64.high %v813_v54, %v808_v19, %v3558_v34  ;;  %vm653_vm0 = vcmp.lt.s32.totalorder %v652_v29, 2  ;;  %vm654_vm1 = vcmp.eq.s32.totalorder %v652_v29, 0  ;;  %v344_v19 = vld [vmem:[%s3183_s4 + $0x38] sm:$0xff] }
 0x101   : > { %v2367_v44 = vadd.s32 4294967294, %v730_v18  ;;  %vm657_vm3 = vcmp.eq.s32.totalorder %v652_v29, 2  ;;  %v718_v6 = vadd.s32 %v3477_v42, %v3472_v22  ;;  %v748_v43 = vsub.s32 4, %v3526_v28 }
 0x102   : > { %v3564_v40 = vpop.eup %2595  ;;  %v2373_v55 = vadd.s32 4294967169, %v872_v27  ;;  %v820_v38 = vmul.u32 %v813_v54, %v804_v24  ;;  %vm822_vm5 = vc.u32 %v3556_v32, %v3558_v34  ;;  %v823_v42 = vadd.s32 1, %v3559_v26 }
 0x103   : > { %vm2368_vm4 = vcmp.lt.s32.totalorder %v2367_v44, 0  ;;  %v3569_v25 = vpop.eup %2597  ;;  %v658_v7 = vxor.u32 2147483648, %v3564_v40  ;;  %v868_v61 = vand.u32 2147483647, %v3534_v36  ;;  %vm664_vm6 = vcmp.lt.s32.totalorder %v3309_v10, 0 }
 0x104   : > { %v733_v60 = vsel %vm2368_vm4, 0, %v2367_v44  ;;  %v655_v50 = vxor.u32 2147483648, %v3569_v25  ;;  %v878_v54 = vadd.s32 1, %v2373_v55  ;;  %v749_v63 = vsel %vm664_vm6, %v748_v43, %v3526_v28 }
 0x105   : > { %v734_v51 = vsub.s32 32, %v733_v60  ;;  %v735_v53 = vshll.u32 %v3542_v5, %v733_v60  ;;  %v738_v59 = vsub.s32 4294967266, %v733_v60  ;;  %v659_v22 = vsel %vm657_vm3, %v658_v7, %v3569_v25 }
 0x106   : > { %v656_v41 = vsel %vm654_vm1, %v3564_v40, %v655_v50  ;;  %v824_v8 = vsel %vm822_vm5, %v823_v42, %v3559_v26  ;;  %vm879_vm7 = vcmp.gt.s32.totalorder %v878_v54, 0  ;;  %v875_v18 = vand.u32 8388607, %v868_v61 }
 0x107   : > { %v736_v5 = vshrl.u32 %v718_v6, %v734_v51  ;;  %v739_v30 = vadd.s32 127, %v738_v59  ;;  %v660_v0 = vsel %vm653_vm0, %v656_v41, %v659_v22  ;;  %v825_v16 = vadd.s32 %v824_v8, %v820_v38 }
 0x108   : > { %v661_v11 = vsel %vm651_vm15, nan, %v660_v0  ;;  %v880_v29 = vsel %vm879_vm7, %v878_v54, 0  ;;  %vm3600_vm8 = vcmp.le.f32.partialorder %v662_v23, 0.7853982  ;;  %v3608_v27 = vmul.f32 6.2831855, %v343_v17 }
 0x109   : > { %v737_v49 = vor.u32 %v736_v5, %v735_v53  ;;  %v740_v12 = vshll.u32 %v739_v30, 23  ;;  %1179 = vst [vmem:[#allocation2 + $0x10] sm:$0xff] %v661_v11  ;;  %v826_v26 = vadd.s32 536870912, %v825_v16  ;;  %v3606_v44 = vsel %vm3600_vm8, 0, %v749_v63 }
 0x10a   : > { %v882_v24 = vand.u32 31, %v880_v29  ;;  %v3611_v43 = vand.u32 3, %v3606_v44  ;;  %v3615_v23 = vmul.f32 6.2831855, %v344_v19  ;;  %v876_v60 = vor.u32 8388608, %v875_v18 }
 0x10b   : > { %v741_v20 = vor.u32 4788187, %v740_v12  ;;  %v744_v21 = vcvt.s32.f32 %v737_v49  ;;  %v3613_v55 = vshrl.u32 %v826_v26, 30  ;;  %v881_v38 = vshrl.u32 %v880_v29, 5 }
 0x10c   : > { %v883_v51 = vsub.s32 32, %v882_v24  ;;  %v885_v53 = vshll.u32 %v2874_v31, %v882_v24  ;;  %v888_v42 = vshll.u32 %v2875_v33, %v882_v24  ;;  %v891_v54 = vshll.u32 %v2876_v35, %v882_v24 }
 0x10d   : > { %v742_v6 = vand.u32 2147483647, %v741_v20  ;;  %v828_v22 = vshll.u32 %v3613_v55, 30  ;;  %v894_v0 = vshll.u32 %v2877_v37, %v882_v24  ;;  %v974_v49 = vand.u32 2139095040, %v3608_v27 }
 0x10e   : > { %v886_v41 = vshrl.u32 %v2875_v33, %v883_v51  ;;  %v889_v5 = vshrl.u32 %v2876_v35, %v883_v51  ;;  %v892_v30 = vshrl.u32 %v2877_v37, %v883_v51  ;;  %v895_v11 = vshrl.u32 %v2878_v39, %v883_v51 }
 0x10f   : > { %v745_v59 = vmul.f32 %v744_v21, %v742_v6  ;;  %v3625_v8 = vsub.s32 %v825_v16, %v828_v22  ;;  %v884_v12 = vshrl.u32 %v2874_v31, %v883_v51  ;;  %vm900_vm9 = vcmp.lt.s32.totalorder %v881_v38, 1 }
 0x110   : > { %v887_v17 = vor.u32 %v886_v41, %v885_v53  ;;  %v3630_v18 = vshll.u32 %v876_v60, 8  ;;  %v890_v20 = vor.u32 %v889_v5, %v888_v42  ;;  %v893_v21 = vor.u32 %v892_v30, %v891_v54 }
 0x111   : > { %v746_v63 = vxor.u32 2147483648, %v745_v59  ;;  %v831_v19 = vsub.s32 0, %v3625_v8  ;;  %v896_v26 = vor.u32 %v895_v11, %v894_v0  ;;  %v897_v6 = vshll.u32 %v2878_v39, %v882_v24 }
 0x112   : > { %v898_v22 = vshrl.u32 %v2879_v47, %v883_v51  ;;  %vm901_vm10 = vcmp.lt.s32.totalorder %v881_v38, 2  ;;  %v975_v53 = vshrl.u32 %v974_v49, 23  ;;  %vm902_vm11 = vcmp.lt.s32.totalorder %v881_v38, 3 }
 0x113   : > { %v747_v29 = vsel %vm664_vm6, %v746_v63, %v745_v59  ;;  %v2370_v60 = vmin.u32 %v831_v19, %v3625_v8  ;;  %vm903_vm13 = vcmp.lt.s32.totalorder %v881_v38, 4  ;;  %vm760_vm14 = vcmp.eq.s32.totalorder %v3611_v43, 2 }
 0x114   : > { %v750_v16 = vsel %vm3600_vm8, %v3309_v10, %v747_v29  ;;  %v899_v59 = vor.u32 %v898_v22, %v897_v6  ;;  %v904_v28 = vsel %vm900_vm9, %v884_v12, %v887_v17  ;;  %v905_v54 = vsel %vm903_vm13, %v893_v21, 2102212464 }
 0x115   : > { %2599 = vcosq.f32 %v750_v16  ;;  %v833_v42 = vclz %v2370_v60  ;;  %v908_v41 = vsel %vm900_vm9, %v887_v17, %v890_v20  ;;  %vm757_vm0 = vcmp.eq.s32.totalorder %v3611_v43, 0 }
 0x116   : > { %2601 = vsinq.f32 %v750_v16  ;;  %v906_v24 = vsel %vm902_vm11, %v890_v20, %v905_v54  ;;  %v909_v51 = vsel %vm903_vm13, %v896_v26, 920167782  ;;  %v912_v5 = vsel %vm900_vm9, %v890_v20, %v893_v21 }
 0x117   : > { %v913_v30 = vsel %vm903_vm13, %v899_v59, 1326507024  ;;  %vm756_vm1 = vcmp.lt.s32.totalorder %v3611_v43, 2  ;;  %vm767_vm3 = vcmp.lt.s32.totalorder %v3343_v1, 0  ;;  %v2371_v0 = vadd.s32 4294967294, %v833_v42 }
 0x118   : > { %v910_v63 = vsel %vm902_vm11, %v893_v21, %v909_v51  ;;  %v914_v11 = vsel %vm902_vm11, %v896_v26, %v913_v30  ;;  %v4171_v49 = vand.u32 2147483647, %v3608_v27  ;;  %vm754_vm4 = vweird.f32 %v3309_v10 }
 0x119   : > { %v821_v12 = vadd.s32 %v3558_v34, %v3556_v32  ;;  %v911_v17 = vsel %vm901_vm10, %v908_v41, %v910_v63  ;;  %v915_v29 = vsel %vm901_vm10, %v912_v5, %v914_v11  ;;  %v2377_v19 = vadd.s32 4294967169, %v975_v53 }
 0x11a   : > { %vm2372_vm5 = vcmp.lt.s32.totalorder %v2371_v0, 0  ;;  %v907_v20 = vsel %vm901_vm10, %v904_v28, %v906_v24  ;;  %v3659_v16 = vmul.u32.u64.low %v3630_v18, %v915_v29  ;;  %v3660_v21 = vmul.u32.u64.high %v3630_v18, %v915_v29, %v3659_v16 }
 0x11b   : > { %v836_v26 = vsel %vm2372_vm5, 0, %v2371_v0  ;;  %v3663_v6 = vmul.u32.u64.low %v3630_v18, %v911_v17  ;;  %v3664_v22 = vmul.u32.u64.high %v3630_v18, %v911_v17, %v3663_v6  ;;  %v981_v60 = vadd.s32 1, %v2377_v19 }
 0x11c   : > { %v837_v32 = vsub.s32 32, %v836_v26  ;;  %v838_v34 = vshll.u32 %v3625_v8, %v836_v26  ;;  %v841_v59 = vsub.s32 4294967266, %v836_v26  ;;  %v978_v53 = vand.u32 8388607, %v4171_v49 }
 0x11d   : > { %v851_v38 = vsub.s32 4, %v3613_v55  ;;  %vm982_vm6 = vcmp.gt.s32.totalorder %v981_v60, 0  ;;  %v3672_v42 = vadd.s32 3, %v3389_v57  ;;  %v3675_v28 = vadd.s32 3, %v3405_v9 }
 0x11e   : > { %vm3681_vm7 = vcmp.le.f32.partialorder %v765_v15, 0.7853982  ;;  %v839_v8 = vshrl.u32 %v821_v12, %v837_v32  ;;  %v842_v24 = vadd.s32 127, %v841_v59  ;;  %v923_v51 = vmul.u32 %v3630_v18, %v907_v20 }
 0x11f   : > { %v3677_v54 = vpop.eup %2599  ;;  %vm925_vm8 = vc.u32 %v3660_v21, %v3663_v6  ;;  %v926_v5 = vadd.s32 1, %v3664_v22  ;;  %v983_v30 = vsel %vm982_vm6, %v981_v60, 0  ;;  %v3693_v0 = vadd.s32 3, %v3547_v45 }
 0x120   : > { %v3688_v57 = vpop.eup %2601  ;;  %v4172_v9 = vxor.u32 2147483648, %v3677_v54  ;;  %v840_v63 = vor.u32 %v839_v8, %v838_v34  ;;  %v843_v11 = vshll.u32 %v842_v24, 23  ;;  %v979_v12 = vor.u32 8388608, %v978_v53 }
 0x121   : > { %v4173_v15 = vxor.u32 2147483648, %v3688_v57  ;;  %v852_v17 = vsel %vm767_vm3, %v851_v38, %v3613_v55  ;;  %v927_v29 = vsel %vm925_vm8, %v926_v5, %v3664_v22  ;;  %v985_v19 = vand.u32 31, %v983_v30 }
 0x122   : > { %v762_v18 = vsel %vm760_vm14, %v4172_v9, %v3688_v57  ;;  %v844_v20 = vor.u32 4788187, %v843_v11  ;;  %v847_v16 = vcvt.s32.f32 %v840_v63  ;;  %v928_v26 = vadd.s32 %v927_v29, %v923_v51 }
 0x123   : > { %v759_v45 = vsel %vm757_vm0, %v3677_v54, %v4173_v15  ;;  %v3712_v32 = vshrl.u32 %v983_v30, 5  ;;  %v986_v34 = vsub.s32 32, %v985_v19  ;;  %v988_v55 = vshll.u32 %v2874_v31, %v985_v19 }
 0x124   : > { %v763_v60 = vsel %vm756_vm1, %v759_v45, %v762_v18  ;;  %v845_v59 = vand.u32 2147483647, %v844_v20  ;;  %v929_v53 = vadd.s32 536870912, %v928_v26  ;;  %v991_v38 = vshll.u32 %v2875_v33, %v985_v19 }
 0x125   : > { %v764_v22 = vsel %vm754_vm4, nan, %v763_v60  ;;  %v989_v8 = vshrl.u32 %v2875_v33, %v986_v34  ;;  %v992_v24 = vshrl.u32 %v2876_v35, %v986_v34  ;;  %v994_v43 = vshll.u32 %v2876_v35, %v985_v19 }
 0x126   : > { %1180 = vst [vmem:[#allocation2 + $0x18] sm:$0xff] %v764_v22  ;;  %v995_v51 = vshrl.u32 %v2877_v37, %v986_v34  ;;  %v848_v5 = vmul.f32 %v847_v16, %v845_v59  ;;  %v930_v30 = vshrl.u32 %v929_v53, 30  ;;  %v997_v63 = vshll.u32 %v2877_v37, %v985_v19 }
 0x127   : > { %v998_v11 = vshrl.u32 %v2878_v39, %v986_v34  ;;  %v3726_v18 = vsel %vm3681_vm7, 0, %v852_v17  ;;  %vm870_vm9 = vcmp.lt.s32.totalorder %v3534_v36, 0  ;;  %v1000_v29 = vshll.u32 %v2878_v39, %v985_v19 }
 0x128   : > { %v3730_v45 = vshll.u32 %v979_v12, 8  ;;  %v1077_v20 = vand.u32 2139095040, %v3615_v23  ;;  %v849_v60 = vxor.u32 2147483648, %v848_v5  ;;  %v931_v22 = vshll.u32 %v930_v30, 30 }
 0x129   : > { %v987_v16 = vshrl.u32 %v2874_v31, %v986_v34  ;;  %v990_v59 = vor.u32 %v989_v8, %v988_v55  ;;  %v993_v53 = vor.u32 %v992_v24, %v991_v38  ;;  %v996_v49 = vor.u32 %v995_v51, %v994_v43 }
 0x12a   : > { %v999_v9 = vor.u32 %v998_v11, %v997_v63  ;;  %v1001_v15 = vshrl.u32 %v2879_v47, %v986_v34  ;;  %v850_v17 = vsel %vm767_vm3, %v849_v60, %v848_v5  ;;  %vm3739_vm10 = vcmp.le.f32.partialorder %v868_v61, 0.7853982 }
 0x12b   : > { %v3743_v19 = vsub.s32 %v928_v26, %v931_v22  ;;  %vm1003_vm11 = vcmp.lt.s32.totalorder %v3712_v32, 1  ;;  %vm1006_vm13 = vcmp.lt.s32.totalorder %v3712_v32, 4  ;;  %v853_v55 = vsel %vm3681_vm7, %v3343_v1, %v850_v17 }
 0x12c   : > { %v954_v34 = vsub.s32 4, %v930_v30  ;;  %v1002_v38 = vor.u32 %v1001_v15, %v1000_v29  ;;  %v1078_v8 = vshrl.u32 %v1077_v20, 23  ;;  %2603 = vcosq.f32 %v853_v55 }
 0x12d   : > { %v934_v24 = vsub.s32 0, %v3743_v19  ;;  %vm1005_vm14 = vcmp.lt.s32.totalorder %v3712_v32, 3  ;;  %v1008_v61 = vsel %vm1006_vm13, %v996_v49, 2102212464  ;;  %2605 = vsinq.f32 %v853_v55 }
 0x12e   : > { %vm1004_vm0 = vcmp.lt.s32.totalorder %v3712_v32, 2  ;;  %v1011_v26 = vsel %vm1003_vm11, %v990_v59, %v993_v53  ;;  %v1012_v41 = vsel %vm1006_vm13, %v999_v9, 920167782  ;;  %v858_v15 = vand.u32 3, %v3726_v18 }
 0x12f   : > { %v2374_v43 = vmin.u32 %v934_v24, %v3743_v19  ;;  %v1007_v51 = vsel %vm1003_vm11, %v987_v16, %v990_v59  ;;  %v4174_v5 = vand.u32 2147483647, %v3615_v23  ;;  %v1009_v63 = vsel %vm1005_vm14, %v993_v53, %v1008_v61 }
 0x130   : > { %v1013_v11 = vsel %vm1005_vm14, %v996_v49, %v1012_v41  ;;  %v1015_v29 = vsel %vm1003_vm11, %v993_v53, %v996_v49  ;;  %v1016_v20 = vsel %vm1006_vm13, %v1002_v38, 1326507024  ;;  %v955_v22 = vsel %vm870_vm9, %v954_v34, %v930_v30 }
 0x131   : > { %v936_v60 = vclz %v2374_v43  ;;  %v1014_v16 = vsel %vm1004_vm0, %v1011_v26, %v1013_v11  ;;  %v1017_v59 = vsel %vm1005_vm14, %v999_v9, %v1016_v20  ;;  %vm857_vm1 = vweird.f32 %v3343_v1 }
 0x132   : > { %v1018_v17 = vsel %vm1004_vm0, %v1015_v29, %v1017_v59  ;;  %v3782_v49 = vmul.u32.u64.low %v3730_v45, %v1014_v16  ;;  %v3783_v53 = vmul.u32.u64.high %v3730_v45, %v1014_v16, %v3782_v49  ;;  %v2381_v55 = vadd.s32 4294967169, %v1078_v8 }
 0x133   : > { %v2375_v38 = vadd.s32 4294967294, %v936_v60  ;;  %v1010_v30 = vsel %vm1004_vm0, %v1007_v51, %v1009_v63  ;;  %v3789_v34 = vmul.u32.u64.low %v3730_v45, %v1018_v17  ;;  %v3790_v24 = vmul.u32.u64.high %v3730_v45, %v1018_v17, %v3789_v34 }
 0x134   : > { %vm859_vm3 = vcmp.lt.s32.totalorder %v858_v15, 2  ;;  %vm860_vm5 = vcmp.eq.s32.totalorder %v858_v15, 0  ;;  %v3794_v9 = vsel %vm3739_vm10, 0, %v955_v22  ;;  %v1084_v61 = vadd.s32 1, %v2381_v55 }
 0x135   : > { %vm863_vm6 = vcmp.eq.s32.totalorder %v858_v15, 2  ;;  %v924_v26 = vadd.s32 %v3663_v6, %v3660_v21  ;;  %vm2376_vm7 = vcmp.lt.s32.totalorder %v2375_v38, 0  ;;  %v3799_v8 = vand.u32 3, %v3794_v9 }
 0x136   : > { %v939_v32 = vsel %vm2376_vm7, 0, %v2375_v38  ;;  %v1026_v41 = vmul.u32 %v3730_v45, %v1010_v30  ;;  %v1029_v43 = vadd.s32 1, %v3783_v53  ;;  %vm1085_vm8 = vcmp.gt.s32.totalorder %v1084_v61, 0  ;;  %v3803_v51 = vpop.eup %2603 }
 0x137   : > { %v940_v63 = vsub.s32 32, %v939_v32  ;;  %v941_v11 = vshll.u32 %v3743_v19, %v939_v32  ;;  %v944_v29 = vsub.s32 4294967266, %v939_v32  ;;  %v1081_v20 = vand.u32 8388607, %v4174_v5  ;;  %v3808_v21 = vpop.eup %2605 }
 0x138   : > { %v4175_v6 = vxor.u32 2147483648, %v3803_v51  ;;  %vm1028_vm11 = vc.u32 %v3790_v24, %v3782_v49  ;;  %v1086_v45 = vsel %vm1085_vm8, %v1084_v61, 0  ;;  %v3814_v60 = vand.u32 3, %v3672_v42 }
 0x139   : > { %v4176_v22 = vxor.u32 2147483648, %v3808_v21  ;;  %v942_v16 = vshrl.u32 %v924_v26, %v940_v63  ;;  %v945_v59 = vadd.s32 127, %v944_v29  ;;  %v1030_v19 = vsel %vm1028_vm11, %v1029_v43, %v3783_v53 }
 0x13a   : > { %v865_v17 = vsel %vm863_vm6, %v4175_v6, %v3808_v21  ;;  %v1031_v55 = vadd.s32 %v1030_v19, %v1026_v41  ;;  %v1088_v38 = vand.u32 31, %v1086_v45  ;;  %v3823_v30 = vand.u32 3, %v3675_v28 }
 0x13b   : > { %v862_v42 = vsel %vm860_vm5, %v3803_v51, %v4176_v22  ;;  %v943_v34 = vor.u32 %v942_v16, %v941_v11  ;;  %v946_v61 = vshll.u32 %v945_v59, 23  ;;  %v3830_v26 = vand.u32 3, %v3693_v0 }
 0x13c   : > { %v866_v53 = vsel %vm859_vm3, %v862_v42, %v865_v17  ;;  %v1032_v32 = vadd.s32 536870912, %v1031_v55  ;;  %v1082_v43 = vor.u32 8388608, %v1081_v20  ;;  %v1089_v63 = vsub.s32 32, %v1088_v38 }
 0x13d   : > { %v867_v41 = vsel %vm857_vm1, nan, %v866_v53  ;;  %v947_v28 = vor.u32 4788187, %v946_v61  ;;  %v950_v29 = vcvt.s32.f32 %v943_v34  ;;  %v1091_v19 = vshll.u32 %v2874_v31, %v1088_v38 }
 0x13e   : > { %1181 = vst [vmem:[#allocation2 + $0x20] sm:$0xff] %v867_v41  ;;  %v3836_v5 = vshrl.u32 %v1032_v32, 30  ;;  %v1092_v11 = vshrl.u32 %v2875_v33, %v1089_v63  ;;  %v1094_v0 = vshll.u32 %v2875_v33, %v1088_v38  ;;  %v1095_v15 = vshrl.u32 %v2876_v35, %v1089_v63 }
 0x13f   : > { %v948_v16 = vand.u32 2147483647, %v947_v28  ;;  %v1087_v59 = vshrl.u32 %v1086_v45, 5  ;;  %v1100_v20 = vshll.u32 %v2877_v37, %v1088_v38  ;;  %v3843_v17 = vadd.s32 3, %v3606_v44 }
 0x140   : > { %v1034_v42 = vshll.u32 %v3836_v5, 30  ;;  %v1097_v34 = vshll.u32 %v2876_v35, %v1088_v38  ;;  %v1098_v61 = vshrl.u32 %v2877_v37, %v1089_v63  ;;  %v3849_v53 = vadd.s32 3, %v3726_v18 }
 0x141   : > { %v951_v32 = vmul.f32 %v950_v29, %v948_v16  ;;  %v1090_v33 = vshrl.u32 %v2874_v31, %v1089_v63  ;;  %v1101_v41 = vshrl.u32 %v2878_v39, %v1089_v63  ;;  %v1103_v45 = vshll.u32 %v2878_v39, %v1088_v38 }
 0x142   : > { %v3854_v28 = vsub.s32 %v1031_v55, %v1034_v42  ;;  %v1093_v44 = vor.u32 %v1092_v11, %v1091_v19  ;;  %v1096_v6 = vor.u32 %v1095_v15, %v1094_v0  ;;  %v1104_v22 = vshrl.u32 %v2879_v47, %v1089_v63 }
 0x143   : > { %vm1280_vm13 = vcmp.lt.s32.totalorder %v3814_v60, 2  ;;  %v952_v35 = vxor.u32 2147483648, %v951_v32  ;;  %v1027_v37 = vadd.s32 %v3782_v49, %v3790_v24  ;;  %v1102_v18 = vor.u32 %v1101_v41, %v1100_v20 }
 0x144   : > { %vm1106_vm14 = vcmp.lt.s32.totalorder %v1087_v59, 1  ;;  %v1037_v31 = vsub.s32 0, %v3854_v28  ;;  %v1099_v29 = vor.u32 %v1098_v61, %v1097_v34  ;;  %vm1107_vm0 = vcmp.lt.s32.totalorder %v1087_v59, 2 }
 0x145   : > { %v3861_v16 = vshll.u32 %v1082_v43, 8  ;;  %v953_v39 = vsel %vm870_vm9, %v952_v35, %v951_v32  ;;  %v1105_v55 = vor.u32 %v1104_v22, %v1103_v45  ;;  %vm1108_vm3 = vcmp.lt.s32.totalorder %v1087_v59, 3 }
 0x146   : > { %vm1109_vm5 = vcmp.lt.s32.totalorder %v1087_v59, 4  ;;  %v956_v47 = vsel %vm3739_vm10, %v3534_v36, %v953_v39  ;;  %v2378_v49 = vmin.u32 %v1037_v31, %v3854_v28  ;;  %v1110_v24 = vsel %vm1106_vm14, %v1090_v33, %v1093_v44 }
 0x147   : > { %v1114_v38 = vsel %vm1106_vm14, %v1093_v44, %v1096_v6  ;;  %2607 = vcosq.f32 %v956_v47  ;;  %v1111_v43 = vsel %vm1109_vm5, %v1099_v29, 2102212464  ;;  %v1115_v63 = vsel %vm1109_vm5, %v1102_v18, 920167782 }
 0x148   : > { %vm1281_vm9 = vcmp.eq.s32.totalorder %v3814_v60, 0  ;;  %2609 = vsinq.f32 %v956_v47  ;;  %v1039_v22 = vclz %v2378_v49  ;;  %v1112_v19 = vsel %vm1108_vm3, %v1096_v6, %v1111_v43 }
 0x149   : > { %v1116_v12 = vsel %vm1108_vm3, %v1099_v29, %v1115_v63  ;;  %vm966_vm10 = vcmp.eq.s32.totalorder %v3799_v8, 2  ;;  %v1113_v11 = vsel %vm1107_vm0, %v1110_v24, %v1112_v19  ;;  %v1118_v15 = vsel %vm1106_vm14, %v1096_v6, %v1099_v29 }
 0x14a   : > { %v1117_v0 = vsel %vm1107_vm0, %v1114_v38, %v1116_v12  ;;  %v1119_v20 = vsel %vm1109_vm5, %v1105_v55, 1326507024  ;;  %vm963_vm6 = vcmp.eq.s32.totalorder %v3799_v8, 0  ;;  %v2379_v42 = vadd.s32 4294967294, %v1039_v22 }
 0x14b   : > { %v1120_v34 = vsel %vm1108_vm3, %v1102_v18, %v1119_v20  ;;  %v3884_v61 = vmul.u32.u64.low %v3861_v16, %v1117_v0  ;;  %v3885_v32 = vmul.u32.u64.high %v3861_v16, %v1117_v0, %v3884_v61  ;;  %vm962_vm7 = vcmp.lt.s32.totalorder %v3799_v8, 2 }
 0x14c   : > { %v1057_v33 = vsub.s32 4, %v3836_v5  ;;  %v1121_v41 = vsel %vm1107_vm0, %v1118_v15, %v1120_v34  ;;  %v1283_v6 = vsel %vm1281_vm9, %v3443_v52, %v449_v62  ;;  %vm1284_vm8 = vcmp.eq.s32.totalorder %v3814_v60, 2 }
 0x14d   : > { %vm960_vm11 = vweird.f32 %v3534_v36  ;;  %vm2380_vm14 = vcmp.lt.s32.totalorder %v2379_v42, 0  ;;  %v3899_v45 = vmul.u32.u64.low %v3861_v16, %v1121_v41  ;;  %v3900_v44 = vmul.u32.u64.high %v3861_v16, %v1121_v41, %v3899_v45 }
 0x14e   : > { %v1286_v59 = vsel %vm1284_vm8, %v452_v56, %v3447_v4  ;;  %v1042_v35 = vsel %vm2380_vm14, 0, %v2379_v42  ;;  %v1129_v18 = vmul.u32 %v3861_v16, %v1113_v11  ;;  %vm1385_vm0 = vcmp.eq.s32.totalorder %v3823_v30, 0 }
 0x14f   : > { %v1287_v31 = vsel %vm1280_vm13, %v1283_v6, %v1286_v59  ;;  %v1043_v62 = vsub.s32 32, %v1042_v35  ;;  %v1044_v29 = vshll.u32 %v3854_v28, %v1042_v35  ;;  %v1047_v39 = vsub.s32 4294967266, %v1042_v35 }
 0x150   : > { %v1132_v55 = vadd.s32 1, %v3885_v32  ;;  %v1288_v47 = vsel %vm445_vm12, nan, %v1287_v31  ;;  %vm1384_vm3 = vcmp.lt.s32.totalorder %v3823_v30, 2  ;;  %v1387_v52 = vsel %vm1385_vm0, %v3483_v13, %v552_v58 }
 0x151   : > { %vm1388_vm5 = vcmp.eq.s32.totalorder %v3823_v30, 2  ;;  %v1045_v4 = vshrl.u32 %v1027_v37, %v1043_v62  ;;  %v1048_v56 = vadd.s32 127, %v1047_v39  ;;  %vm1131_vm13 = vc.u32 %v3900_v44, %v3884_v61  ;;  %2017 = vst [vmem:[#allocation3] sm:$0xff] %v1288_v47  ;;  %v3921_v60 = vpop.eup %2607 }
 0x152   : > { %vm1488_vm9 = vcmp.lt.s32.totalorder %v3830_v26, 2  ;;  %v1133_v2 = vsel %vm1131_vm13, %v1132_v55, %v3885_v32  ;;  %v1390_v28 = vsel %vm1388_vm5, %v555_v48, %v3488_v46  ;;  %vm1489_vm12 = vcmp.eq.s32.totalorder %v3830_v26, 0  ;;  %v3929_v58 = vpop.eup %2609 }
 0x153   : > { %vm1492_vm8 = vcmp.eq.s32.totalorder %v3830_v26, 2  ;;  %v967_v37 = vxor.u32 2147483648, %v3921_v60  ;;  %v1046_v16 = vor.u32 %v1045_v4, %v1044_v29  ;;  %v1049_v49 = vshll.u32 %v1048_v56, 23 }
 0x154   : > { %v1134_v24 = vadd.s32 %v1133_v2, %v1129_v18  ;;  %v964_v38 = vxor.u32 2147483648, %v3929_v58  ;;  %v1391_v43 = vsel %vm1384_vm3, %v1387_v52, %v1390_v28  ;;  %v1491_v13 = vsel %vm1489_vm12, %v3564_v40, %v655_v50 }
 0x155   : > { %v1494_v46 = vsel %vm1492_vm8, %v658_v7, %v3569_v25  ;;  %v968_v48 = vsel %vm966_vm10, %v967_v37, %v3929_v58  ;;  %v1050_v63 = vor.u32 4788187, %v1049_v49  ;;  %v1053_v22 = vcvt.s32.f32 %v1046_v16 }
 0x156   : > { %v1135_v19 = vadd.s32 536870912, %v1134_v24  ;;  %v965_v30 = vsel %vm963_vm6, %v3921_v60, %v964_v38  ;;  %v1392_v50 = vsel %vm548_vm2, nan, %v1391_v43  ;;  %v1495_v40 = vsel %vm1488_vm9, %v1491_v13, %v1494_v46 }
 0x157   : > { %v1591_v25 = vand.u32 3, %v3843_v17  ;;  %v969_v7 = vsel %vm962_vm7, %v965_v30, %v968_v48  ;;  %v1051_v12 = vand.u32 2147483647, %v1050_v63  ;;  %2018 = vst [vmem:[#allocation3 + $0x8] sm:$0xff] %v1392_v50  ;;  %v1496_v0 = vsel %vm651_vm15, nan, %v1495_v40 }
 0x158   : > { %v3956_v11 = vshrl.u32 %v1135_v19, 30  ;;  %v970_v15 = vsel %vm960_vm11, nan, %v969_v7  ;;  %2019 = vst [vmem:[#allocation3 + $0x10] sm:$0xff] %v1496_v0  ;;  %vm973_vm14 = vcmp.lt.s32.totalorder %v3608_v27, 0  ;;  %v4219_v26 = vxor.u32 2147483648, %v3688_v57 }
 0x159   : > { %vm1592_vm2 = vcmp.lt.s32.totalorder %v1591_v25, 2  ;;  %vm1593_vm10 = vcmp.eq.s32.totalorder %v1591_v25, 0  ;;  %vm1596_vm6 = vcmp.eq.s32.totalorder %v1591_v25, 2  ;;  %1182 = vst [vmem:[#allocation2 + $0x28] sm:$0xff] %v970_v15  ;;  %v1054_v3 = vmul.f32 %v1053_v22, %v1051_v12 }
 0x15a   : > { %v1137_v8 = vshll.u32 %v3956_v11, 30  ;;  %v1595_v17 = vsel %vm1593_vm10, %v3677_v54, %v4219_v26  ;;  %v1058_v14 = vsel %vm973_vm14, %v1057_v33, %v3836_v5  ;;  %v4220_v20 = vxor.u32 2147483648, %v3677_v54 }
 0x15b   : > { %v1695_v34 = vand.u32 3, %v3849_v53  ;;  %v1798_v32 = vadd.s32 3, %v3794_v9  ;;  %v4221_v41 = vand.u32 2147483647, %v3608_v27  ;;  %v1055_v6 = vxor.u32 2147483648, %v1054_v3 }
 0x15c   : > { %v1598_v42 = vsel %vm1596_vm6, %v4220_v20, %v3688_v57  ;;  %v1138_v45 = vsub.s32 %v1134_v24, %v1137_v8  ;;  %v4222_v57 = vxor.u32 2147483648, %v3808_v21  ;;  %v4223_v10 = vxor.u32 2147483648, %v3803_v51 }
 0x15d   : > { %vm972_vm15 = vcmp.le.f32.partialorder %v4221_v41, 0.7853982  ;;  %v1599_v59 = vsel %vm1592_vm2, %v1595_v17, %v1598_v42  ;;  %vm1697_vm7 = vcmp.eq.s32.totalorder %v1695_v34, 0  ;;  %v1056_v18 = vsel %vm973_vm14, %v1055_v6, %v1054_v3 }
 0x15e   : > { %v1600_v35 = vsel %vm754_vm4, nan, %v1599_v59  ;;  %v1060_v5 = vsel %vm972_vm15, 0, %v1058_v14  ;;  %v1140_v33 = vsub.s32 0, %v1138_v45  ;;  %vm1696_vm0 = vcmp.lt.s32.totalorder %v1695_v34, 2 }
 0x15f   : > { %2020 = vst [vmem:[#allocation3 + $0x18] sm:$0xff] %v1600_v35  ;;  %v1059_v54 = vsel %vm972_vm15, %v3608_v27, %v1056_v18  ;;  %v1699_v9 = vsel %vm1697_vm7, %v3803_v51, %v4222_v57  ;;  %vm1700_vm3 = vcmp.eq.s32.totalorder %v1695_v34, 2  ;;  %v1799_v53 = vand.u32 3, %v1798_v32 }
 0x160   : > { %2611 = vcosq.f32 %v1059_v54  ;;  %v2382_v31 = vmin.u32 %v1140_v33, %v1138_v45  ;;  %v1702_v62 = vsel %vm1700_vm3, %v4223_v10, %v3808_v21  ;;  %v1902_v29 = vadd.s32 3, %v1060_v5 }
 0x161   : > { %2613 = vsinq.f32 %v1059_v54  ;;  %vm1800_vm4 = vcmp.lt.s32.totalorder %v1799_v53, 2  ;;  %v1703_v55 = vsel %vm1696_vm0, %v1699_v9, %v1702_v62  ;;  %vm1801_vm5 = vcmp.eq.s32.totalorder %v1799_v53, 0 }
 0x162   : > { %v1142_v39 = vclz %v2382_v31  ;;  %vm1804_vm13 = vcmp.eq.s32.totalorder %v1799_v53, 2  ;;  %v1704_v47 = vsel %vm857_vm1, nan, %v1703_v55  ;;  %v1803_v52 = vsel %vm1801_vm5, %v3921_v60, %v964_v38 }
 0x163   : > { %v1806_v4 = vsel %vm1804_vm13, %v967_v37, %v3929_v58  ;;  %2021 = vst [vmem:[#allocation3 + $0x20] sm:$0xff] %v1704_v47  ;;  %v1064_v21 = vand.u32 3, %v1060_v5  ;;  %v1130_v28 = vadd.s32 %v3884_v61, %v3900_v44  ;;  %v1903_v1 = vand.u32 3, %v1902_v29 }
 0x164   : > { %v2383_v56 = vadd.s32 4294967294, %v1142_v39  ;;  %v1807_v2 = vsel %vm1800_vm4, %v1803_v52, %v1806_v4  ;;  %vm1063_vm6 = vweird.f32 %v3608_v27  ;;  %v1160_v12 = vsub.s32 4, %v3956_v11 }
 0x165   : > { %v1808_v51 = vsel %vm960_vm11, nan, %v1807_v2  ;;  %vm1069_vm1 = vcmp.eq.s32.totalorder %v1064_v21, 2  ;;  %vm1908_vm12 = vcmp.eq.s32.totalorder %v1903_v1, 2  ;;  %vm1065_vm8 = vcmp.lt.s32.totalorder %v1064_v21, 2 }
 0x166   : > { %vm2384_vm9 = vcmp.lt.s32.totalorder %v2383_v56, 0  ;;  %2022 = vst [vmem:[#allocation3 + $0x28] sm:$0xff] %v1808_v51  ;;  %vm1066_vm2 = vcmp.eq.s32.totalorder %v1064_v21, 0  ;;  %vm1905_vm11 = vcmp.eq.s32.totalorder %v1903_v1, 0  ;;  %vm1904_vm10 = vcmp.lt.s32.totalorder %v1903_v1, 2 }
 0x167   : > { %v1145_v16 = vsel %vm2384_vm9, 0, %v2383_v56  ;;  %vm1076_vm14 = vcmp.lt.s32.totalorder %v3615_v23, 0  ;;  %v4224_v27 = vand.u32 2147483647, %v3615_v23  ;;  %vm1166_vm9 = vweird.f32 %v3615_v23 }
 0x168   : > { %v1146_v49 = vsub.s32 32, %v1145_v16  ;;  %v1147_v24 = vshll.u32 %v1138_v45, %v1145_v16  ;;  %v1150_v38 = vsub.s32 4294967266, %v1145_v16  ;;  %v1161_v8 = vsel %vm1076_vm14, %v1160_v12, %v3956_v11 }
 0x169   : > { %vm1075_vm15 = vcmp.le.f32.partialorder %v4224_v27, 0.7853982 }
 0x16a   : > { %v2612_v43 = vpop.eup %2611  ;;  %v1148_v60 = vshrl.u32 %v1130_v28, %v1146_v49  ;;  %v1151_v58 = vadd.s32 127, %v1150_v38  ;;  %v1163_v14 = vsel %vm1075_vm15, 0, %v1161_v8 }
 0x16b   : > { %v2614_v37 = vpop.eup %2613  ;;  %v1070_v36 = vxor.u32 2147483648, %v2612_v43  ;;  %v2006_v20 = vadd.s32 3, %v1163_v14  ;;  %v1167_v42 = vand.u32 3, %v1163_v14 }
 0x16c   : > { %v1067_v13 = vxor.u32 2147483648, %v2614_v37  ;;  %v1149_v46 = vor.u32 %v1148_v60, %v1147_v24  ;;  %v1152_v61 = vshll.u32 %v1151_v58, 23 }
 0x16d   : > { %v1071_v44 = vsel %vm1069_vm1, %v1070_v36, %v2614_v37  ;;  %v1910_v48 = vsel %vm1908_vm12, %v1070_v36, %v2614_v37  ;;  %v2007_v34 = vand.u32 3, %v2006_v20  ;;  %vm1172_vm7 = vcmp.eq.s32.totalorder %v1167_v42, 2 }
 0x16e   : > { %v1068_v63 = vsel %vm1066_vm2, %v2612_v43, %v1067_v13  ;;  %v1153_v22 = vor.u32 4788187, %v1152_v61  ;;  %v1156_v19 = vcvt.s32.f32 %v1149_v46  ;;  %v1907_v30 = vsel %vm1905_vm11, %v2612_v43, %v1067_v13 }
 0x16f   : > { %v1072_v50 = vsel %vm1065_vm8, %v1068_v63, %v1071_v44  ;;  %v1911_v40 = vsel %vm1904_vm10, %v1907_v30, %v1910_v48  ;;  %vm2012_vm0 = vcmp.eq.s32.totalorder %v2007_v34, 2  ;;  %vm1169_vm3 = vcmp.eq.s32.totalorder %v1167_v42, 0 }
 0x170   : > { %v1073_v25 = vsel %vm1063_vm6, nan, %v1072_v50  ;;  %v1154_v7 = vand.u32 2147483647, %v1153_v22  ;;  %v1912_v0 = vsel %vm1063_vm6, nan, %v1911_v40  ;;  %vm2009_vm4 = vcmp.eq.s32.totalorder %v2007_v34, 0 }
 0x171   : > { %1183 = vst [vmem:[#allocation2 + $0x30] sm:$0xff] %v1073_v25  ;;  %2023 = vst [vmem:[#allocation3 + $0x30] sm:$0xff] %v1912_v0  ;;  %vm1168_vm5 = vcmp.lt.s32.totalorder %v1167_v42, 2  ;;  %vm2008_vm13 = vcmp.lt.s32.totalorder %v2007_v34, 2 }
 0x172   : > { %v1157_v15 = vmul.f32 %v1156_v19, %v1154_v7 }
 0x174   : > { %v1158_v3 = vxor.u32 2147483648, %v1157_v15 }
 0x176   : > { %v1159_v26 = vsel %vm1076_vm14, %v1158_v3, %v1157_v15 }
 0x177   : > { %v1162_v17 = vsel %vm1075_vm15, %v3615_v23, %v1159_v26 }
 0x178   : > { %2615 = vcosq.f32 %v1162_v17 }
 0x179   : > { %2617 = vsinq.f32 %v1162_v17 }
 0x182   : > { %v2616_v32 = vpop.eup %2615 }
 0x183   : > { %v2618_v41 = vpop.eup %2617  ;;  %v1173_v6 = vxor.u32 2147483648, %v2616_v32 }
 0x184   : > { %v1170_v45 = vxor.u32 2147483648, %v2618_v41 }
 0x185   : > { %v1174_v11 = vsel %vm1172_vm7, %v1173_v6, %v2618_v41  ;;  %v2014_v59 = vsel %vm2012_vm0, %v1173_v6, %v2618_v41 }
 0x186   : > { %v1171_v35 = vsel %vm1169_vm3, %v2616_v32, %v1170_v45  ;;  %v2011_v18 = vsel %vm2009_vm4, %v2616_v32, %v1170_v45 }
 0x187   : > { %v1175_v5 = vsel %vm1168_vm5, %v1171_v35, %v1174_v11  ;;  %v2015_v33 = vsel %vm2008_vm13, %v2011_v18, %v2014_v59 }
 0x188   : > { %v1176_v54 = vsel %vm1166_vm9, nan, %v1175_v5  ;;  %v2016_v57 = vsel %vm1166_vm9, nan, %v2015_v33 }
 0x189   : > { %1184 = vst [vmem:[#allocation2 + $0x38] sm:$0xff] %v1176_v54  ;;  %2024 = vst [vmem:[#allocation3 + $0x38] sm:$0xff] %v2016_v57 }
 0x18a PF: > { %v2025_v9 = vld [vmem:[#allocation2] sm:$0xff]  ;;  %v2026_v62 = vld [vmem:[#allocation2 + $0x8] sm:$0xff]  ;;  %v2027_v4 = vld [vmem:[#allocation2 + $0x10] sm:$0xff]  ;;  %s2419_s26 = sshll.u32 %s2855_s22, 3  ;;  %s2420_s6 = sshll.u32 %s2851_s21, 4 }
 0x18b   : > { %v2033_v53 = vld [vmem:[#allocation3] sm:$0xff]  ;;  %v2034_v29 = vld [vmem:[#allocation3 + $0x8] sm:$0xff]  ;;  %v2035_v21 = vld [vmem:[#allocation3 + $0x10] sm:$0xff]  ;;  %s4022_s21 = sadd.s32 %s2420_s6, %s2419_s26  ;;  %s2142_s22 = sshll.u32 %s3202_s27, 4  ;;  %s4035_s22 = int_to_ptr.vmem [resolvable:$true] %s2142_s22 }
 0x18c   : > { %v2041_v23 = vld [vmem:[%s3194_s23] sm:$0xff]  ;;  %v2042_v47 = vld [vmem:[%s3194_s23 + $0x8] sm:$0xff]  ;;  %v2043_v28 = vld [vmem:[%s3194_s23 + $0x10] sm:$0xff]  ;;  %s2421_s28 = sshll.u32 %s4022_s21, 7  ;;  %s2160_s14 = sshll.u32 %s3204_s15, 4  ;;  %s4053_s14 = int_to_ptr.vmem [resolvable:$true] %s2160_s14 }
 0x18d   : > { %v2049_v31 = vld [vmem:[%s3200_s30] sm:$0xff]  ;;  %v2057_v10 = vmul.f32 %v2041_v23, %v2025_v9  ;;  %v2089_v39 = vmul.f32 %v2041_v23, %v2033_v53  ;;  %v2050_v52 = vld [vmem:[%s3200_s30 + $0x8] sm:$0xff]  ;;  %v2058_v2 = vmul.f32 %v2042_v47, %v2026_v62  ;;  %v2051_v1 = vld [vmem:[%s3200_s30 + $0x10] sm:$0xff]  ;;  %v2090_v16 = vmul.f32 %v2042_v47, %v2034_v29  ;;  %s4225_s9 = sld [smem:[#allocation25_spill]]  ;;  %s4226_s11 = sld [smem:[#allocation26_spill]] }
 0x18e   : > { %v2065_v55 = vmul.f32 %v2049_v31, %v2033_v53  ;;  %v2097_v56 = vmul.f32 %v2049_v31, %v2025_v9  ;;  %v2066_v51 = vmul.f32 %v2050_v52, %v2034_v29  ;;  %v2098_v49 = vmul.f32 %v2050_v52, %v2026_v62  ;;  %v2028_v60 = vld [vmem:[#allocation2 + $0x18] sm:$0xff]  ;;  %v2029_v44 = vld [vmem:[#allocation2 + $0x20] sm:$0xff]  ;;  %v2030_v25 = vld [vmem:[#allocation2 + $0x28] sm:$0xff]  ;;  %s2122_s5 = scalar_lea.sflag [#allocation6], %s3191_s1  ;;  %s2709_s17 = scalar_lea.vmem %s4035_s22, 1024 }
 0x18f   : > { %v2059_v38 = vmul.f32 %v2043_v28, %v2027_v4  ;;  %v2067_v43 = vmul.f32 %v2051_v1, %v2035_v21  ;;  %v2036_v58 = vld [vmem:[#allocation3 + $0x18] sm:$0xff]  ;;  %v2037_v48 = vld [vmem:[#allocation3 + $0x20] sm:$0xff]  ;;  %v2091_v22 = vmul.f32 %v2043_v28, %v2035_v21  ;;  %v2099_v7 = vmul.f32 %v2051_v1, %v2027_v4  ;;  %v2038_v27 = vld [vmem:[#allocation3 + $0x28] sm:$0xff]  ;;  %p2710_p3 = scmp.ne.s32.totalorder %s4035_s22, %s2709_s17  ;;  %p4227_p4 = scmp.ne.s32.totalorder %s4186_s7, 0 }
 0x190   : > { %v2073_v24 = vsub.f32 %v2057_v10, %v2065_v55  ;;  %v2044_v37 = vld [vmem:[%s3194_s23 + $0x18] sm:$0xff]  ;;  %v2105_v36 = vadd.f32 %v2097_v56, %v2089_v39  ;;  %v2074_v13 = vsub.f32 %v2058_v2, %v2066_v51  ;;  %v2106_v63 = vadd.f32 %v2098_v49, %v2090_v16  ;;  %v2045_v50 = vld [vmem:[%s3194_s23 + $0x20] sm:$0xff]  ;;  %v2046_v3 = vld [vmem:[%s3194_s23 + $0x28] sm:$0xff]  ;;  %s2880_s29 = smov [#allocation10]  }
 0x191   : > { %v2052_v46 = vld [vmem:[%s3200_s30 + $0x18] sm:$0xff]  ;;  %v2060_v61 = vmul.f32 %v2044_v37, %v2028_v60  ;;  %v2075_v19 = vsub.f32 %v2059_v38, %v2067_v43  ;;  %v2053_v40 = vld [vmem:[%s3200_s30 + $0x20] sm:$0xff]  ;;  %v2092_v12 = vmul.f32 %v2044_v37, %v2036_v58  ;;  %v2061_v0 = vmul.f32 %v2045_v50, %v2029_v44  ;;  %v2054_v8 = vld [vmem:[%s3200_s30 + $0x28] sm:$0xff]  ;;  %p2711_p1 = pnand %p2710_p3, %p4227_p4 }
 0x192   : > { %2081 = vst [vmem:[%s3202_s27] sm:$0xff] %v2073_v24  ;;  %v2068_v30 = vmul.f32 %v2052_v46, %v2036_v58  ;;  %2113 = vst [vmem:[%s3204_s15] sm:$0xff] %v2105_v36  ;;  %v2069_v15 = vmul.f32 %v2053_v40, %v2037_v48  ;;  %v2100_v26 = vmul.f32 %v2052_v46, %v2028_v60  ;;  %v2031_v34 = vld [vmem:[#allocation2 + $0x30] sm:$0xff]  ;;  %v2032_v35 = vld [vmem:[#allocation2 + $0x38] sm:$0xff] }
 0x193   : > { %2082 = vst [vmem:[%s3202_s27 + $0x8] sm:$0xff] %v2074_v13  ;;  %2114 = vst [vmem:[%s3204_s15 + $0x8] sm:$0xff] %v2106_v63  ;;  %v2093_v17 = vmul.f32 %v2045_v50, %v2037_v48  ;;  %v2062_v20 = vmul.f32 %v2046_v3, %v2030_v25  ;;  %v2070_v42 = vmul.f32 %v2054_v8, %v2038_v27  ;;  %v2039_v32 = vld [vmem:[#allocation3 + $0x30] sm:$0xff]  ;;  %v2040_v18 = vld [vmem:[#allocation3 + $0x38] sm:$0xff]  ;;  %s4043_s10 = scalar_lea.hbm %s4225_s9, %s2421_s28  ;;  %s4051_s4 = scalar_lea.hbm %s4226_s11, %s2421_s28 }
 0x194   : > { %2083 = vst [vmem:[%s3202_s27 + $0x10] sm:$0xff] %v2075_v19  ;;  %v2076_v14 = vsub.f32 %v2060_v61, %v2068_v30  ;;  %v2047_v41 = vld [vmem:[%s3194_s23 + $0x30] sm:$0xff]  ;;  %v2107_v6 = vadd.f32 %v2099_v7, %v2091_v22  ;;  %v2077_v45 = vsub.f32 %v2061_v0, %v2069_v15  ;;  %v2108_v5 = vadd.f32 %v2100_v26, %v2092_v12  ;;  %v2048_v9 = vld [vmem:[%s3194_s23 + $0x38] sm:$0xff]  ;;  %p2712_p6 = pneg %p2711_p1  ;;  %s2713_s23 = sshll.u32 %s2880_s29, 4  ;;  %s2714_s23 = int_to_ptr.vmem [resolvable:$false] %s2713_s23 }
 0x195   : > { %v2055_v11 = vld [vmem:[%s3200_s30 + $0x30] sm:$0xff]  ;;  %v2063_v59 = vmul.f32 %v2047_v41, %v2031_v34  ;;  %v2101_v33 = vmul.f32 %v2053_v40, %v2029_v44  ;;  %v2078_v54 = vsub.f32 %v2062_v20, %v2070_v42  ;;  %v2056_v53 = vld [vmem:[%s3200_s30 + $0x38] sm:$0xff]  ;;  %v2094_v23 = vmul.f32 %v2046_v3, %v2038_v27  ;;  %s2715_s30 = scalar_lea.vmem %s2714_s23, 2048  ;;  %p2716_p10 = scmp.lt.s32.totalorder %s4035_s22, %s2714_s23 }
 0x196   : > { %2084 = vst [vmem:[%s3202_s27 + $0x18] sm:$0xff] %v2076_v14  ;;  %v2071_v57 = vmul.f32 %v2055_v11, %v2039_v32  ;;  %2115 = vst [vmem:[%s3204_s15 + $0x10] sm:$0xff] %v2107_v6  ;;  %v2102_v31 = vmul.f32 %v2054_v8, %v2030_v25  ;;  %v2064_v10 = vmul.f32 %v2048_v9, %v2032_v35  ;;  %p2717_p7 = scmp.lt.s32.totalorder %s2715_s30, %s2709_s17 }
 0x197   : > { %2085 = vst [vmem:[%s3202_s27 + $0x20] sm:$0xff] %v2077_v45  ;;  %v2072_v62 = vmul.f32 %v2056_v53, %v2040_v18  ;;  %2116 = vst [vmem:[%s3204_s15 + $0x18] sm:$0xff] %v2108_v5  ;;  %v2109_v29 = vadd.f32 %v2101_v33, %v2093_v17  ;;  %v2095_v39 = vmul.f32 %v2047_v41, %v2039_v32 }
 0x198   : > { %2086 = vst [vmem:[%s3202_s27 + $0x28] sm:$0xff] %v2078_v54  ;;  %v2079_v55 = vsub.f32 %v2063_v59, %v2071_v57  ;;  %v2110_v47 = vadd.f32 %v2102_v31, %v2094_v23  ;;  %v2103_v52 = vmul.f32 %v2055_v11, %v2031_v34  ;;  %v2096_v4 = vmul.f32 %v2048_v9, %v2040_v18  ;;  %p2718_p5 = por %p2717_p7, %p2716_p10 }
 0x199   : > { %v2080_v56 = vsub.f32 %v2064_v10, %v2072_v62  ;;  %2117 = vst [vmem:[%s3204_s15 + $0x20] sm:$0xff] %v2109_v29  ;;  %v2104_v2 = vmul.f32 %v2056_v53, %v2032_v35 }
 0x19a   : > { %2087 = vst [vmem:[%s3202_s27 + $0x30] sm:$0xff] %v2079_v55  ;;  %2118 = vst [vmem:[%s3204_s15 + $0x28] sm:$0xff] %v2110_v47  ;;  %v2111_v51 = vadd.f32 %v2103_v52, %v2095_v39  ;;  %p2719_p12 = pnand %p2718_p5, %p2712_p6 }
 0x19b   : > { %2088 = vst [vmem:[%s3202_s27 + $0x38] sm:$0xff] %v2080_v56  ;;  %v2112_v21 = vadd.f32 %v2104_v2, %v2096_v4 }
 0x19c   : > { %2119 = vst [vmem:[%s3204_s15 + $0x30] sm:$0xff] %v2111_v51 }
 0x19d   : > { %2722 = shalt.err (!%p2719_p12)
}
 0x19e   : > { %s2723_s27 = scalar_lea.hbm %s4043_s10, 1024  ;;  %s2727_s21 = scalar_lea.hbm %s4225_s9, 4096 }
 0x19f   : > { %p2724_p13 = scmp.ne.s32.totalorder %s4043_s10, %s2723_s27  ;;  %p2728_p2 = scmp.lt.u32.totalorder %s4043_s10, %s4225_s9 }
 0x1a0   : > { %p2729_p0 = scmp.lt.u32.totalorder %s2727_s21, %s2723_s27  ;;  %p2731_p3 = scmp.lt.u32.totalorder %s2723_s27, %s4043_s10 }
 0x1a1   : > { %p2725_p9 = pnand %p2724_p13, %p4227_p4 }
 0x1a2   : > { %p2730_p8 = por %p2729_p0, %p2728_p2 }
 0x1a3   : > { %p2726_p11 = pneg %p2725_p9 }
 0x1a4   : > { %p2732_p1 = por %p2731_p3, %p2730_p8 }
 0x1a6   : > { %p2733_p6 = pnand %p2732_p1, %p2726_p11 }
 0x1a8   : > { %2736 = shalt.err (!%p2733_p6)
}
 0x1a9   : > { %s2881_s8 = smov 128   ;;  %s2882_s13 = smov 8   ;;  %2120 = vst [vmem:[%s3204_s15 + $0x38] sm:$0xff] %v2112_v21 }
 0x1aa   : > { %2466 = dma.vmem_to_hbm [thread:$0]  (%p4227_p4), %s4035_s22, 1024, %s4043_s10, %s2122_s5, %s2881_s8, %s2881_s8, %s2882_s13  }
 0x1ab   : > { %s2127_s18 = scalar_lea.sflag [#allocation12], %s3191_s1  ;;  %s2737_s17 = scalar_lea.vmem %s4053_s14, 1024 }
 0x1ac   : > { %p2738_p10 = scmp.ne.s32.totalorder %s4053_s14, %s2737_s17  ;;  %s2883_s29 = smov [#allocation11]  }
 0x1ad   : > { %s2741_s23 = sshll.u32 %s2883_s29, 4  ;;  %s2742_s23 = int_to_ptr.vmem [resolvable:$false] %s2741_s23 }
 0x1ae   : > { %p2739_p7 = pnand %p2738_p10, %p4227_p4  ;;  %s2743_s30 = scalar_lea.vmem %s2742_s23, 2048 }
 0x1af   : > { %p2744_p12 = scmp.lt.s32.totalorder %s4053_s14, %s2742_s23  ;;  %p2745_p13 = scmp.lt.s32.totalorder %s2743_s30, %s2737_s17 }
 0x1b0   : > { %p2740_p5 = pneg %p2739_p7 }
 0x1b1   : > { %p2746_p9 = por %p2745_p13, %p2744_p12 }
 0x1b3   : > { %p2747_p11 = pnand %p2746_p9, %p2740_p5 }
 0x1b5   : > { %2750 = shalt.err (!%p2747_p11)
}
 0x1b6   : > { %s2751_s15 = scalar_lea.hbm %s4051_s4, 1024  ;;  %s2755_s5 = scalar_lea.hbm %s4226_s11, 4096 }
 0x1b7   : > { %p2752_p2 = scmp.ne.s32.totalorder %s4051_s4, %s2751_s15  ;;  %p2756_p3 = scmp.lt.u32.totalorder %s4051_s4, %s4226_s11 }
 0x1b8   : > { %p2757_p1 = scmp.lt.u32.totalorder %s2755_s5, %s2751_s15  ;;  %p2759_p10 = scmp.lt.u32.totalorder %s2751_s15, %s4051_s4 }
 0x1b9   : > { %p2753_p0 = pnand %p2752_p2, %p4227_p4 }
 0x1ba   : > { %p2758_p6 = por %p2757_p1, %p2756_p3 }
 0x1bb   : > { %p2754_p8 = pneg %p2753_p0 }
 0x1bc   : > { %p2760_p7 = por %p2759_p10, %p2758_p6 }
 0x1be   : > { %p2761_p5 = pnand %p2760_p7, %p2754_p8 }
 0x1c0   : > { %2764 = shalt.err (!%p2761_p5)
}
 0x1c1   : > { %2467 = dma.vmem_to_hbm [thread:$0]  (%p4227_p4), %s4053_s14, 1024, %s4051_s4, %s2127_s18, %s2881_s8, %s2881_s8, %s2882_s13  }
 0x1c2 PF: > { %s4228_s6 = sld [smem:[#allocation17_spill]]  ;;  %s4229_s21 = sld [smem:[#allocation22_spill]] }
 0x1c3   : > { %p2488_p12 = scmp.ge.s32.totalorder %s2867_s25, 2 }
 0x1c8   : > { %s2175_s28 = sand.u32 1, %s4228_s6   ;;  %p4230_p13 = scmp.ne.s32.totalorder %s4229_s21, 0 }
 0x1c9   : > { %s2176_s12 = scalar_lea.sflag [#allocation6], %s2175_s28 }
 0x1ca   : > { %p2481_p9 = pnand %p2488_p12, %p4230_p13 }
 0x1cc   : > { %2818 = dma.done.wait (!%p2481_p9), %s2176_s12, 1024  }
 0x1cd   : > { %2820 = vsyncadd (!%p2481_p9), %s2176_s12, 4294966272  ;;  %s2185_s7 = scalar_lea.sflag [#allocation12], %s2175_s28 }
 0x1ce   : > { %2822 = dma.done.wait (!%p2481_p9), %s2185_s7, 1024  }
 0x1cf   : > { %2824 = vsyncadd (!%p2481_p9), %s2185_s7, 4294966272  ;;  %s27_s25 = sadd.s32 1, %s2867_s25   ;;  %s4231_s1 = sld [smem:[#allocation18_spill]] }
 0x1d0   : > { %p24_p11 = scmp.ge.s32.totalorder %s27_s25, 6   ;;  %s4232_s17 = sld [smem:[#allocation23_spill]] }
 0x1d1   : > { %s4233_s21 = sld [smem:[#allocation19_spill]]  ;;  %s4234_s23 = sld [smem:[#allocation20_spill]] }
 0x1d2   : > { %s4235_s14 = sld [smem:[#allocation21_spill]]  ;;  %s4236_s15 = smov %s2831_s16 }
 0x1d3   : > { %s4238_s18 = smov %s2843_s19  ;;  %s4239_s19 = smov %s2847_s20 }
 0x1d4   : > { %s4240_s20 = smov %s3091_s3  ;;  %s4241_s22 = smov %s2863_s24 }
 0x1d5   : > { %s4237_s16 = smov %s4231_s1  ;;  %26 = sbr.rel (!%p24_p11) target bundleno = 17 (0x11), region = 122 }
 0x1d8   : > { %s4242_s24 = smov %s4235_s14 }
 0x1dc   :  { %2190 = vsyncpa [#allocation5], 1 }
 0x1dd   :  { %2192 = vsyncpa [#allocation5 + $0x1], 1 }
 0x1de   :  { %2193 = vsyncpa [#allocation8], 1 }
 0x1df   :  { %2195 = vsyncpa [#allocation8 + $0x1], 1 }
 0x1e0   :  { %2196 = vsyncpa [#allocation6], 1 }
 0x1e1   :  { %2198 = vsyncpa [#allocation6 + $0x1], 1 }
 0x1e2   :  { %2199 = vsyncpa [#allocation12], 1 }
 0x1e3   :  { %2201 = vsyncpa [#allocation12 + $0x1], 1 }

</bundles_post_ra>
